<compile_context>
chip_gen: v5e
topology: v5e:2x2
jax: 0.10.0
libtpu: 0.0.40
codegen_flags: <defaults>
</compile_context>

<pallas_src>
import functools

import jax
import jax.numpy as jnp
from jax.experimental import pallas as pl
from jax.experimental.pallas import tpu as pltpu

EPS = 1e-5

# streaming-mask defaults (gen_mask(look_ahead, hist_frame, T))
DEFAULT_HIST_FRAME = 3
DEFAULT_LOOK_AHEAD = 1

# indices (in the raw 29-entry params list) of MXU matmul weights; these are
# cast to bf16 by the caller — accumulation stays f32 via preferred_element_type.
_MATMUL_WEIGHT_IDX = (2, 4, 8, 9, 10, 11, 15, 19, 23, 25)


def _sigmoid(v):
    return 1.0 / (1.0 + jnp.exp(-v))


def _swish(v):
    return v * _sigmoid(v)


def _layer_norm(x, g, b):
    mu = jnp.mean(x, axis=-1, keepdims=True)
    var = jnp.mean((x - mu) ** 2, axis=-1, keepdims=True)
    return (x - mu) * jax.lax.rsqrt(var + EPS) * g + b


def _mm(a, w):
    """Matmul with the activation cast to the weight dtype, f32 accumulation."""
    return jnp.dot(a.astype(w.dtype), w, preferred_element_type=jnp.float32)


def cast_matmul_weights(params, dtype):
    """Cast only the MXU matmul weights (not LN params / biases / dw taps)."""
    return [p.astype(dtype) if i in _MATMUL_WEIGHT_IDX else p
            for i, p in enumerate(params)]


# -----------------------------------------------------------------------------
# Pallas kernel: whole conformer block for ONE batch element per grid step.
# -----------------------------------------------------------------------------
def conformer_kernel(
    x_ref,
    ln1_g, ln1_b, f1w1, f1b1, f1w2, f1b2,
    lna_g, lna_b, wqkv, wo, bo,
    lnc_g, lnc_b, pw1_w, pw1_b, dw_w, dw_b, pw2_w, pw2_b,
    ln2_g, ln2_b, f2w1, f2b1, f2w2, f2b2,
    lnp_g, lnp_b,
    out_ref,
    o_scr, conv_scr,
    *, heads, dim_head, kernel_size, hist_frame, look_ahead,
):
    x = x_ref[0]                        # (T, C) float32 — one batch element
    T, C = x.shape
    cd = wqkv.dtype                     # matmul compute dtype (bf16 or f32)
    hd = heads * dim_head

    # ---------------- FF1 : Scale(0.5, PreNorm(FeedForward)) — no residual ----
    # (reproduces the reference forward() as written: x = ff1(x))
    h = _layer_norm(x, ln1_g[...], ln1_b[...])
    h = _swish(_mm(h, f1w1[...]) + f1b1[...])
    x = 0.5 * (_mm(h, f1w2[...]) + f1b2[...])

    # ---------------- Attention (PreNorm) + residual --------------------------
    xn = _layer_norm(x, lna_g[...], lna_b[...])
    qkv = _mm(xn, wqkv[...])            # (T, 3*H*Dh) — single fused QKV matmul
    scale = dim_head ** -0.5

    # Streaming band mask from 1-D iotas (per-batch, so no cross-batch check
    # and no O(T^2) integer div/mod).
    ti = jax.lax.broadcasted_iota(jnp.int32, (T, 1), 0)
    tj = jax.lax.broadcasted_iota(jnp.int32, (1, T), 1)
    allowed = (tj <= ti + look_ahead) & (tj >= ti - hist_frame)   # (T, T)
    neg = jnp.float32(-1e30)

    # TODO(synk): for long streaming T, replace the (T, T) scores with a banded
    # softmax over a (q_tile, hist_frame+look_ahead+1)-wide K/V window.
    for hh in range(heads):             # short static unroll
        lo = hh * dim_head
        qh = qkv[:, lo:lo + dim_head].astype(cd)
        kh = qkv[:, hd + lo:hd + lo + dim_head].astype(cd)
        vh = qkv[:, 2 * hd + lo:2 * hd + lo + dim_head].astype(cd)
        s = jnp.dot(qh, kh.T, preferred_element_type=jnp.float32) * scale
        s = jnp.where(allowed, s, neg)
        s = s - jnp.max(s, axis=-1, keepdims=True)
        p = jnp.exp(s)
        p = p * pl.reciprocal(jnp.sum(p, axis=-1, keepdims=True), approx=True)
        # stash this head's output; a single Wo matmul follows the loop
        o_scr[:, lo:lo + dim_head] = jnp.dot(
            p.astype(cd), vh, preferred_element_type=jnp.float32)
    x = _mm(o_scr[...], wo[...]) + bo[...] + x

    # ---------------- Conformer conv module (causal) + residual ---------------
    xc = _layer_norm(x, lnc_g[...], lnc_b[...])
    h = _mm(xc, pw1_w[...]) + pw1_b[...]
    inner = h.shape[-1] // 2
    h = h[:, :inner] * _sigmoid(h[:, inner:])                 # GLU
    pad = kernel_size - 1
    # causal depthwise conv: persistent left-padded VMEM scratch, K static taps
    # (no jnp.concatenate copy; per-batch grid -> no cross-batch leakage).
    conv_scr[0:pad, :] = jnp.zeros((pad, inner), jnp.float32)
    conv_scr[pad:pad + T, :] = h
    hp = conv_scr[...]                                        # (pad+T, inner)
    dwv = dw_w[...]                                           # (K, inner) f32
    acc = jnp.zeros((T, inner), jnp.float32)
    # TODO(synk): the K shifted slices are sublane-unaligned copies; for large
    # T switch to pltpu.roll along axis 0 (XLU slot) with a row mask.
    for kk in range(kernel_size):
        acc = acc + hp[kk:kk + T, :] * dwv[kk:kk + 1, :]
    h = _swish(acc + dw_b[...])
    # (BatchNorm is Identity in the causal branch of ConformerConvModule)
    x = _mm(h, pw2_w[...]) + pw2_b[...] + x

    # ---------------- FF2 : Scale(0.5, PreNorm(FeedForward)) + residual -------
    h = _layer_norm(x, ln2_g[...], ln2_b[...])
    h = _swish(_mm(h, f2w1[...]) + f2b1[...])
    x = 0.5 * (_mm(h, f2w2[...]) + f2b2[...]) + x

    # ---------------- post LayerNorm -------------------------------------------
    # TODO(synk): if production C < 128 (lane-sparse), reshape the output slab
    # lane-dense around the store for v5e's single vst slot.
    out_ref[0] = _layer_norm(x, lnp_g[...], lnp_b[...])


# -----------------------------------------------------------------------------
# Wrapper
# -----------------------------------------------------------------------------
def conformer_block_stream(x, params, *, heads, dim_head, kernel_size,
                           hist_frame=DEFAULT_HIST_FRAME,
                           look_ahead=DEFAULT_LOOK_AHEAD):
    B, T, C = x.shape
    (ln1_g, ln1_b, f1w1, f1b1, f1w2, f1b2,
     lna_g, lna_b, wq, wk, wv, wo, bo,
     lnc_g, lnc_b, pw1_w, pw1_b, dw_w, dw_b, pw2_w, pw2_b,
     ln2_g, ln2_b, f2w1, f2b1, f2w2, f2b2,
     lnp_g, lnp_b) = params

    # Fuse QKV in the wrapper (one MXU weight-load pass, one weight DMA).
    wqkv = jnp.concatenate([wq, wk, wv], axis=1)
    kparams = [ln1_g, ln1_b, f1w1, f1b1, f1w2, f1b2,
               lna_g, lna_b, wqkv, wo, bo,
               lnc_g, lnc_b, pw1_w, pw1_b, dw_w, dw_b, pw2_w, pw2_b,
               ln2_g, ln2_b, f2w1, f2b1, f2w2, f2b2,
               lnp_g, lnp_b]

    inner = pw1_w.shape[1] // 2
    hd = heads * dim_head

    kern = functools.partial(
        conformer_kernel, heads=heads, dim_head=dim_head,
        kernel_size=kernel_size, hist_frame=hist_frame, look_ahead=look_ahead)

    # Weights: grid-invariant full blocks (Pallas re-uses the buffer across
    # grid steps since the block index never changes).
    # TODO(synk): mark weight specs pipeline_mode=pl.Buffered(1) once single
    # buffering of invariant inputs is confirmed on the target jax version
    # (VMEM saver on v7x's 64 MiB).
    def wspec(p):
        nd = p.ndim
        return pl.BlockSpec(p.shape, lambda b, _nd=nd: (0,) * _nd)

    in_specs = [pl.BlockSpec((1, T, C), lambda b: (b, 0, 0))] \
        + [wspec(p) for p in kparams]

    # Explicit VMEM budget sized from the actual footprint (double-buffered
    # activations + weights + scratch), capped below v7x's 64 MiB physical.
    param_bytes = sum(int(p.size) * p.dtype.itemsize for p in kparams)
    act_bytes = T * C * 4
    scratch_bytes = (T * hd + (kernel_size - 1 + T) * inner) * 4
    vmem_limit = int(min(64 << 20,
                         2 * param_bytes + 32 * act_bytes + 4 * scratch_bytes
                         + (16 << 20)))

    out = pl.pallas_call(
        kern,
        out_shape=jax.ShapeDtypeStruct((B, T, C), jnp.float32),
        grid=(B,),
        in_specs=in_specs,
        out_specs=pl.BlockSpec((1, T, C), lambda b: (b, 0, 0)),
        scratch_shapes=[
            pltpu.VMEM((T, hd), jnp.float32),                        # head outs
            pltpu.VMEM((kernel_size - 1 + T, inner), jnp.float32),   # conv pad
        ],
        compiler_params=pltpu.CompilerParams(
            dimension_semantics=("parallel",),      # megacore on v7x
            vmem_limit_bytes=vmem_limit),
    )(x, *kparams)
    return out


# -----------------------------------------------------------------------------
# Pure-JAX reference (same math, vectorized over batch) for verification
# -----------------------------------------------------------------------------
def reference(x, params, *, heads, dim_head, kernel_size, hist_frame, look_ahead):
    (ln1_g, ln1_b, f1w1, f1b1, f1w2, f1b2,
     lna_g, lna_b, wq, wk, wv, wo, bo,
     lnc_g, lnc_b, pw1_w, pw1_b, dw_w, dw_b, pw2_w, pw2_b,
     ln2_g, ln2_b, f2w1, f2b1, f2w2, f2b2,
     lnp_g, lnp_b) = params

    B, T, C = x.shape
    cd = wq.dtype
    i = jnp.arange(T)[:, None]
    j = jnp.arange(T)[None, :]
    maskb = (j <= i + look_ahead) & (j >= i - hist_frame)

    h = _swish(_mm(_layer_norm(x, ln1_g, ln1_b), f1w1) + f1b1)
    x = 0.5 * (_mm(h, f1w2) + f1b2)

    xn = _layer_norm(x, lna_g, lna_b)
    q = _mm(xn, wq).reshape(B, T, heads, dim_head).transpose(0, 2, 1, 3)
    k = _mm(xn, wk).reshape(B, T, heads, dim_head).transpose(0, 2, 1, 3)
    v = _mm(xn, wv).reshape(B, T, heads, dim_head).transpose(0, 2, 1, 3)
    s = jnp.einsum('bhtd,bhsd->bhts', q.astype(cd), k.astype(cd),
                   preferred_element_type=jnp.float32) * (dim_head ** -0.5)
    s = jnp.where(maskb[None, None], s, -1e30)
    p = jax.nn.softmax(s, axis=-1)
    o = jnp.einsum('bhts,bhsd->bhtd', p.astype(cd), v.astype(cd),
                   preferred_element_type=jnp.float32)
    o = o.transpose(0, 2, 1, 3).reshape(B, T, heads * dim_head)
    x = _mm(o, wo) + bo + x

    xc = _layer_norm(x, lnc_g, lnc_b)
    h = _mm(xc, pw1_w) + pw1_b
    inner = h.shape[-1] // 2
    h = h[..., :inner] * _sigmoid(h[..., inner:])
    hp = jnp.pad(h, ((0, 0), (kernel_size - 1, 0), (0, 0)))
    acc = sum(hp[:, kk:kk + T, :] * dw_w[kk][None, None, :]
              for kk in range(kernel_size))
    h = _swish(acc + dw_b)
    x = _mm(h, pw2_w) + pw2_b + x

    h = _swish(_mm(_layer_norm(x, ln2_g, ln2_b), f2w1) + f2b1)
    x = 0.5 * (_mm(h, f2w2) + f2b2) + x
    return _layer_norm(x, lnp_g, lnp_b)


# -----------------------------------------------------------------------------
# Parameter construction (deterministic, synthetic)
# -----------------------------------------------------------------------------
def init_params(key, *, dim, heads, dim_head, ff_mult, conv_expansion, kernel_size):
    hid = dim * ff_mult
    di = heads * dim_head
    inner = dim * conv_expansion
    keys = jax.random.split(key, 20)
    ki = iter(range(20))

    def dense(shape, scale=0.05):
        return scale * jax.random.normal(keys[next(ki)], shape, jnp.float32)

    ones = lambda n: jnp.ones((1, n), jnp.float32)
    zeros = lambda n: jnp.zeros((1, n), jnp.float32)

    params = [
        # FF1: PreNorm LN + Linear(dim,hid) + Swish + Linear(hid,dim)
        ones(dim), zeros(dim),
        dense((dim, hid)), dense((1, hid)),
        dense((hid, dim)), dense((1, dim)),
        # Attention: PreNorm LN + Wq/Wk/Wv (no bias) + Wo (+bias)
        ones(dim), zeros(dim),
        dense((dim, di)), dense((dim, di)), dense((dim, di)),
        dense((di, dim)), dense((1, dim)),
        # Conv module: LN + pointwise(dim -> 2*inner) + GLU + depthwise(K, causal)
        #              + Swish + pointwise(inner -> dim)
        ones(dim), zeros(dim),
        dense((dim, 2 * inner)), dense((1, 2 * inner)),
        dense((kernel_size, inner)), dense((1, inner)),
        dense((inner, dim)), dense((1, dim)),
        # FF2
        ones(dim), zeros(dim),
        dense((dim, hid)), dense((1, hid)),
        dense((hid, dim)), dense((1, dim)),
        # post LayerNorm
        ones(dim), zeros(dim),
    ]
    return params


# -----------------------------------------------------------------------------
if __name__ == "__main__":
    # small shapes consistent with the module
    B, T, DIM = 2, 8, 32
    HEADS, DIM_HEAD = 2, 16
    FF_MULT, CONV_EXP, KSIZE = 4, 2, 7
    HIST_FRAME, LOOK_AHEAD = DEFAULT_HIST_FRAME, DEFAULT_LOOK_AHEAD

    root = jax.random.PRNGKey(0)
    kx, kp = jax.random.split(root)
    x = jax.random.normal(kx, (B, T, DIM), jnp.float32)
    params = init_params(kp, dim=DIM, heads=HEADS, dim_head=DIM_HEAD,
                         ff_mult=FF_MULT, conv_expansion=CONV_EXP,
                         kernel_size=KSIZE)
    # Cast MXU matmul weights to bf16 (f32 accumulation); LN params, biases and
    # the depthwise taps stay f32. Both kernel and reference use these params.
    params = cast_matmul_weights(params, jnp.bfloat16)

    out = conformer_block_stream(x, params, heads=HEADS, dim_head=DIM_HEAD,
                                 kernel_size=KSIZE, hist_frame=HIST_FRAME,
                                 look_ahead=LOOK_AHEAD)
    out = jax.block_until_ready(out)

    ref = jax.block_until_ready(
        reference(x, params, heads=HEADS, dim_head=DIM_HEAD,
                  kernel_size=KSIZE, hist_frame=HIST_FRAME,
                  look_ahead=LOOK_AHEAD))

    assert out.shape == (B, T, DIM) and out.dtype == jnp.float32
    max_err = float(jnp.max(jnp.abs(out - ref)))
    # tolerance covers the EUP approx reciprocal in softmax + accumulation-order
    # differences; bf16 weight rounding is identical in kernel and reference.
    assert max_err < 1e-2, f"mismatch vs reference: max abs err {max_err}"
    print("KERNEL_OK")
</pallas_src>

<mosaic_0001>
module attributes {stable_mosaic.version = 11 : i64} {
  func.func @conformer_kernel(%arg0: i32, %arg1: memref<1x8x32xf32, #tpu.memory_space<vmem>>, %arg2: memref<1x32xf32, #tpu.memory_space<vmem>>, %arg3: memref<1x32xf32, #tpu.memory_space<vmem>>, %arg4: memref<32x128xbf16, #tpu.memory_space<vmem>>, %arg5: memref<1x128xf32, #tpu.memory_space<vmem>>, %arg6: memref<128x32xbf16, #tpu.memory_space<vmem>>, %arg7: memref<1x32xf32, #tpu.memory_space<vmem>>, %arg8: memref<1x32xf32, #tpu.memory_space<vmem>>, %arg9: memref<1x32xf32, #tpu.memory_space<vmem>>, %arg10: memref<32x96xbf16, #tpu.memory_space<vmem>>, %arg11: memref<32x32xbf16, #tpu.memory_space<vmem>>, %arg12: memref<1x32xf32, #tpu.memory_space<vmem>>, %arg13: memref<1x32xf32, #tpu.memory_space<vmem>>, %arg14: memref<1x32xf32, #tpu.memory_space<vmem>>, %arg15: memref<32x128xbf16, #tpu.memory_space<vmem>>, %arg16: memref<1x128xf32, #tpu.memory_space<vmem>>, %arg17: memref<7x64xf32, #tpu.memory_space<vmem>>, %arg18: memref<1x64xf32, #tpu.memory_space<vmem>>, %arg19: memref<64x32xbf16, #tpu.memory_space<vmem>>, %arg20: memref<1x32xf32, #tpu.memory_space<vmem>>, %arg21: memref<1x32xf32, #tpu.memory_space<vmem>>, %arg22: memref<1x32xf32, #tpu.memory_space<vmem>>, %arg23: memref<32x128xbf16, #tpu.memory_space<vmem>>, %arg24: memref<1x128xf32, #tpu.memory_space<vmem>>, %arg25: memref<128x32xbf16, #tpu.memory_space<vmem>>, %arg26: memref<1x32xf32, #tpu.memory_space<vmem>>, %arg27: memref<1x32xf32, #tpu.memory_space<vmem>>, %arg28: memref<1x32xf32, #tpu.memory_space<vmem>>, %arg29: memref<1x8x32xf32, #tpu.memory_space<vmem>>, %arg30: memref<8x32xf32, #tpu.memory_space<vmem>>, %arg31: memref<14x64xf32, #tpu.memory_space<vmem>>) attributes {dimension_semantics = [#tpu.dimension_semantics<parallel>], iteration_bounds = array<i64: 2>, scalar_prefetch = 0 : i64, scratch_operands = 2 : i64, tpu.core_type = #tpu.core_type<tc>, window_params = [{transform_indices = @transform_0, window_bounds = array<i64: 1, 8, 32>}, {pipeline_mode = #tpu.pipeline_mode<synchronous>, transform_indices = @transform_1, window_bounds = array<i64: 1, 32>}, {pipeline_mode = #tpu.pipeline_mode<synchronous>, transform_indices = @transform_2, window_bounds = array<i64: 1, 32>}, {pipeline_mode = #tpu.pipeline_mode<synchronous>, transform_indices = @transform_3, window_bounds = array<i64: 32, 128>}, {pipeline_mode = #tpu.pipeline_mode<synchronous>, transform_indices = @transform_4, window_bounds = array<i64: 1, 128>}, {pipeline_mode = #tpu.pipeline_mode<synchronous>, transform_indices = @transform_5, window_bounds = array<i64: 128, 32>}, {pipeline_mode = #tpu.pipeline_mode<synchronous>, transform_indices = @transform_6, window_bounds = array<i64: 1, 32>}, {pipeline_mode = #tpu.pipeline_mode<synchronous>, transform_indices = @transform_7, window_bounds = array<i64: 1, 32>}, {pipeline_mode = #tpu.pipeline_mode<synchronous>, transform_indices = @transform_8, window_bounds = array<i64: 1, 32>}, {pipeline_mode = #tpu.pipeline_mode<synchronous>, transform_indices = @transform_9, window_bounds = array<i64: 32, 96>}, {pipeline_mode = #tpu.pipeline_mode<synchronous>, transform_indices = @transform_10, window_bounds = array<i64: 32, 32>}, {pipeline_mode = #tpu.pipeline_mode<synchronous>, transform_indices = @transform_11, window_bounds = array<i64: 1, 32>}, {pipeline_mode = #tpu.pipeline_mode<synchronous>, transform_indices = @transform_12, window_bounds = array<i64: 1, 32>}, {pipeline_mode = #tpu.pipeline_mode<synchronous>, transform_indices = @transform_13, window_bounds = array<i64: 1, 32>}, {pipeline_mode = #tpu.pipeline_mode<synchronous>, transform_indices = @transform_14, window_bounds = array<i64: 32, 128>}, {pipeline_mode = #tpu.pipeline_mode<synchronous>, transform_indices = @transform_15, window_bounds = array<i64: 1, 128>}, {pipeline_mode = #tpu.pipeline_mode<synchronous>, transform_indices = @transform_16, window_bounds = array<i64: 7, 64>}, {pipeline_mode = #tpu.pipeline_mode<synchronous>, transform_indices = @transform_17, window_bounds = array<i64: 1, 64>}, {pipeline_mode = #tpu.pipeline_mode<synchronous>, transform_indices = @transform_18, window_bounds = array<i64: 64, 32>}, {pipeline_mode = #tpu.pipeline_mode<synchronous>, transform_indices = @transform_19, window_bounds = array<i64: 1, 32>}, {pipeline_mode = #tpu.pipeline_mode<synchronous>, transform_indices = @transform_20, window_bounds = array<i64: 1, 32>}, {pipeline_mode = #tpu.pipeline_mode<synchronous>, transform_indices = @transform_21, window_bounds = array<i64: 1, 32>}, {pipeline_mode = #tpu.pipeline_mode<synchronous>, transform_indices = @transform_22, window_bounds = array<i64: 32, 128>}, {pipeline_mode = #tpu.pipeline_mode<synchronous>, transform_indices = @transform_23, window_bounds = array<i64: 1, 128>}, {pipeline_mode = #tpu.pipeline_mode<synchronous>, transform_indices = @transform_24, window_bounds = array<i64: 128, 32>}, {pipeline_mode = #tpu.pipeline_mode<synchronous>, transform_indices = @transform_25, window_bounds = array<i64: 1, 32>}, {pipeline_mode = #tpu.pipeline_mode<synchronous>, transform_indices = @transform_26, window_bounds = array<i64: 1, 32>}, {pipeline_mode = #tpu.pipeline_mode<synchronous>, transform_indices = @transform_27, window_bounds = array<i64: 1, 32>}, {transform_indices = @transform_28, window_bounds = array<i64: 1, 8, 32>}]} {
    %c0 = arith.constant 0 : index
    %c0_0 = arith.constant 0 : index
    %c0_1 = arith.constant 0 : index
    %0 = vector.load %arg1[%c0, %c0_0, %c0_1] : memref<1x8x32xf32, #tpu.memory_space<vmem>>, vector<1x8x32xf32>
    %1 = vector.shape_cast %0 : vector<1x8x32xf32> to vector<8x32xf32>
    %c0_2 = arith.constant 0 : index
    %c0_3 = arith.constant 0 : index
    %2 = vector.load %arg2[%c0_2, %c0_3] : memref<1x32xf32, #tpu.memory_space<vmem>>, vector<1x32xf32>
    %c0_4 = arith.constant 0 : index
    %c0_5 = arith.constant 0 : index
    %3 = vector.load %arg3[%c0_4, %c0_5] : memref<1x32xf32, #tpu.memory_space<vmem>>, vector<1x32xf32>
    %cst = arith.constant dense<0.000000e+00> : vector<8xf32>
    %4 = vector.multi_reduction <add>, %1, %cst [1] : vector<8x32xf32> to vector<8xf32>
    %5 = vector.shape_cast %4 : vector<8xf32> to vector<8x1xf32>
    %cst_6 = arith.constant 3.200000e+01 : f32
    %6 = vector.broadcast %cst_6 : f32 to vector<8x1xf32>
    %7 = arith.divf %5, %6 : vector<8x1xf32>
    %8 = vector.broadcast %7 : vector<8x1xf32> to vector<8x32xf32>
    %9 = arith.subf %1, %8 : vector<8x32xf32>
    %10 = arith.mulf %9, %9 : vector<8x32xf32>
    %cst_7 = arith.constant dense<0.000000e+00> : vector<8xf32>
    %11 = vector.multi_reduction <add>, %10, %cst_7 [1] : vector<8x32xf32> to vector<8xf32>
    %12 = vector.shape_cast %11 : vector<8xf32> to vector<8x1xf32>
    %cst_8 = arith.constant 3.200000e+01 : f32
    %13 = vector.broadcast %cst_8 : f32 to vector<8x1xf32>
    %14 = arith.divf %12, %13 : vector<8x1xf32>
    %15 = vector.broadcast %7 : vector<8x1xf32> to vector<8x32xf32>
    %16 = arith.subf %1, %15 : vector<8x32xf32>
    %cst_9 = arith.constant 9.99999974E-6 : f32
    %17 = vector.broadcast %cst_9 : f32 to vector<8x1xf32>
    %18 = arith.addf %14, %17 : vector<8x1xf32>
    %19 = math.rsqrt %18 : vector<8x1xf32>
    %20 = vector.broadcast %19 : vector<8x1xf32> to vector<8x32xf32>
    %21 = arith.mulf %16, %20 : vector<8x32xf32>
    %22 = vector.broadcast %2 : vector<1x32xf32> to vector<8x32xf32>
    %23 = arith.mulf %21, %22 : vector<8x32xf32>
    %24 = vector.broadcast %3 : vector<1x32xf32> to vector<8x32xf32>
    %25 = arith.addf %23, %24 : vector<8x32xf32>
    %c0_10 = arith.constant 0 : index
    %c0_11 = arith.constant 0 : index
    %26 = vector.load %arg4[%c0_10, %c0_11] : memref<32x128xbf16, #tpu.memory_space<vmem>>, vector<32x128xbf16>
    %27 = arith.truncf %25 : vector<8x32xf32> to vector<8x32xbf16>
    %cst_12 = arith.constant dense<0.000000e+00> : vector<8x128xf32>
    %28 = tpu.matmul %27, %26, %cst_12 {dimension_numbers = #tpu.dot_dimension_numbers<[1], [0], [0], [1], [0, 0, 1, 1], [], []>} : vector<8x32xbf16>, vector<32x128xbf16>, vector<8x128xf32> -> vector<8x128xf32>
    %c0_13 = arith.constant 0 : index
    %c0_14 = arith.constant 0 : index
    %29 = vector.load %arg5[%c0_13, %c0_14] : memref<1x128xf32, #tpu.memory_space<vmem>>, vector<1x128xf32>
    %30 = vector.broadcast %29 : vector<1x128xf32> to vector<8x128xf32>
    %31 = arith.addf %28, %30 : vector<8x128xf32>
    %cst_15 = arith.constant 0.000000e+00 : f32
    %32 = vector.broadcast %cst_15 : f32 to vector<8x128xf32>
    %33 = arith.subf %32, %31 : vector<8x128xf32>
    %34 = math.exp %33 : vector<8x128xf32>
    %cst_16 = arith.constant 1.000000e+00 : f32
    %35 = vector.broadcast %cst_16 : f32 to vector<8x128xf32>
    %36 = arith.addf %35, %34 : vector<8x128xf32>
    %cst_17 = arith.constant 1.000000e+00 : f32
    %37 = vector.broadcast %cst_17 : f32 to vector<8x128xf32>
    %38 = arith.divf %37, %36 : vector<8x128xf32>
    %39 = arith.mulf %31, %38 : vector<8x128xf32>
    %c0_18 = arith.constant 0 : index
    %c0_19 = arith.constant 0 : index
    %40 = vector.load %arg6[%c0_18, %c0_19] : memref<128x32xbf16, #tpu.memory_space<vmem>>, vector<128x32xbf16>
    %41 = arith.truncf %39 : vector<8x128xf32> to vector<8x128xbf16>
    %cst_20 = arith.constant dense<0.000000e+00> : vector<8x32xf32>
    %42 = tpu.matmul %41, %40, %cst_20 {dimension_numbers = #tpu.dot_dimension_numbers<[1], [0], [0], [1], [0, 0, 1, 1], [], []>} : vector<8x128xbf16>, vector<128x32xbf16>, vector<8x32xf32> -> vector<8x32xf32>
    %c0_21 = arith.constant 0 : index
    %c0_22 = arith.constant 0 : index
    %43 = vector.load %arg7[%c0_21, %c0_22] : memref<1x32xf32, #tpu.memory_space<vmem>>, vector<1x32xf32>
    %44 = vector.broadcast %43 : vector<1x32xf32> to vector<8x32xf32>
    %45 = arith.addf %42, %44 : vector<8x32xf32>
    %cst_23 = arith.constant 5.000000e-01 : f32
    %46 = vector.broadcast %cst_23 : f32 to vector<8x32xf32>
    %47 = arith.mulf %46, %45 : vector<8x32xf32>
    %c0_24 = arith.constant 0 : index
    %c0_25 = arith.constant 0 : index
    %48 = vector.load %arg8[%c0_24, %c0_25] : memref<1x32xf32, #tpu.memory_space<vmem>>, vector<1x32xf32>
    %c0_26 = arith.constant 0 : index
    %c0_27 = arith.constant 0 : index
    %49 = vector.load %arg9[%c0_26, %c0_27] : memref<1x32xf32, #tpu.memory_space<vmem>>, vector<1x32xf32>
    %cst_28 = arith.constant dense<0.000000e+00> : vector<8xf32>
    %50 = vector.multi_reduction <add>, %47, %cst_28 [1] : vector<8x32xf32> to vector<8xf32>
    %51 = vector.shape_cast %50 : vector<8xf32> to vector<8x1xf32>
    %cst_29 = arith.constant 3.200000e+01 : f32
    %52 = vector.broadcast %cst_29 : f32 to vector<8x1xf32>
    %53 = arith.divf %51, %52 : vector<8x1xf32>
    %54 = vector.broadcast %53 : vector<8x1xf32> to vector<8x32xf32>
    %55 = arith.subf %47, %54 : vector<8x32xf32>
    %56 = arith.mulf %55, %55 : vector<8x32xf32>
    %cst_30 = arith.constant dense<0.000000e+00> : vector<8xf32>
    %57 = vector.multi_reduction <add>, %56, %cst_30 [1] : vector<8x32xf32> to vector<8xf32>
    %58 = vector.shape_cast %57 : vector<8xf32> to vector<8x1xf32>
    %cst_31 = arith.constant 3.200000e+01 : f32
    %59 = vector.broadcast %cst_31 : f32 to vector<8x1xf32>
    %60 = arith.divf %58, %59 : vector<8x1xf32>
    %61 = vector.broadcast %53 : vector<8x1xf32> to vector<8x32xf32>
    %62 = arith.subf %47, %61 : vector<8x32xf32>
    %cst_32 = arith.constant 9.99999974E-6 : f32
    %63 = vector.broadcast %cst_32 : f32 to vector<8x1xf32>
    %64 = arith.addf %60, %63 : vector<8x1xf32>
    %65 = math.rsqrt %64 : vector<8x1xf32>
    %66 = vector.broadcast %65 : vector<8x1xf32> to vector<8x32xf32>
    %67 = arith.mulf %62, %66 : vector<8x32xf32>
    %68 = vector.broadcast %48 : vector<1x32xf32> to vector<8x32xf32>
    %69 = arith.mulf %67, %68 : vector<8x32xf32>
    %70 = vector.broadcast %49 : vector<1x32xf32> to vector<8x32xf32>
    %71 = arith.addf %69, %70 : vector<8x32xf32>
    %c0_33 = arith.constant 0 : index
    %c0_34 = arith.constant 0 : index
    %72 = vector.load %arg10[%c0_33, %c0_34] : memref<32x96xbf16, #tpu.memory_space<vmem>>, vector<32x96xbf16>
    %73 = arith.truncf %71 : vector<8x32xf32> to vector<8x32xbf16>
    %cst_35 = arith.constant dense<0.000000e+00> : vector<8x96xf32>
    %74 = tpu.matmul %73, %72, %cst_35 {dimension_numbers = #tpu.dot_dimension_numbers<[1], [0], [0], [1], [0, 0, 1, 1], [], []>} : vector<8x32xbf16>, vector<32x96xbf16>, vector<8x96xf32> -> vector<8x96xf32>
    %75 = tpu.iota {dimensions = array<i32: 0>} : vector<8x1xi32>
    %76 = tpu.iota {dimensions = array<i32: 1>} : vector<1x8xi32>
    %c1_i32 = arith.constant 1 : i32
    %77 = vector.broadcast %c1_i32 : i32 to vector<8x1xi32>
    %78 = arith.addi %75, %77 : vector<8x1xi32>
    %79 = vector.broadcast %76 : vector<1x8xi32> to vector<8x8xi32>
    %80 = vector.broadcast %78 : vector<8x1xi32> to vector<8x8xi32>
    %81 = arith.cmpi sle, %79, %80 : vector<8x8xi32>
    %c3_i32 = arith.constant 3 : i32
    %82 = vector.broadcast %c3_i32 : i32 to vector<8x1xi32>
    %83 = arith.subi %75, %82 : vector<8x1xi32>
    %84 = vector.broadcast %76 : vector<1x8xi32> to vector<8x8xi32>
    %85 = vector.broadcast %83 : vector<8x1xi32> to vector<8x8xi32>
    %86 = arith.cmpi sge, %84, %85 : vector<8x8xi32>
    %87 = arith.andi %81, %86 : vector<8x8xi1>
    %88 = vector.extract_strided_slice %74 {offsets = [0, 0], sizes = [8, 16], strides = [1, 1]} : vector<8x96xf32> to vector<8x16xf32>
    %89 = arith.truncf %88 : vector<8x16xf32> to vector<8x16xbf16>
    %90 = vector.extract_strided_slice %74 {offsets = [0, 32], sizes = [8, 16], strides = [1, 1]} : vector<8x96xf32> to vector<8x16xf32>
    %91 = arith.truncf %90 : vector<8x16xf32> to vector<8x16xbf16>
    %92 = vector.extract_strided_slice %74 {offsets = [0, 64], sizes = [8, 16], strides = [1, 1]} : vector<8x96xf32> to vector<8x16xf32>
    %93 = arith.truncf %92 : vector<8x16xf32> to vector<8x16xbf16>
    %94 = tpu.transpose %91, [1, 0] : vector<8x16xbf16> -> vector<16x8xbf16>
    %cst_36 = arith.constant dense<0.000000e+00> : vector<8x8xf32>
    %95 = tpu.matmul %89, %94, %cst_36 {dimension_numbers = #tpu.dot_dimension_numbers<[1], [0], [0], [1], [0, 0, 1, 1], [], []>} : vector<8x16xbf16>, vector<16x8xbf16>, vector<8x8xf32> -> vector<8x8xf32>
    %cst_37 = arith.constant 2.500000e-01 : f32
    %96 = vector.broadcast %cst_37 : f32 to vector<8x8xf32>
    %97 = arith.mulf %95, %96 : vector<8x8xf32>
    %cst_38 = arith.constant -1.000000e+30 : f32
    %98 = vector.broadcast %cst_38 : f32 to vector<8x8xf32>
    %99 = arith.select %87, %97, %98 : vector<8x8xi1>, vector<8x8xf32>
    %cst_39 = arith.constant dense<0xFF800000> : vector<8xf32>
    %100 = vector.multi_reduction <maximumf>, %99, %cst_39 [1] : vector<8x8xf32> to vector<8xf32>
    %101 = vector.shape_cast %100 : vector<8xf32> to vector<8x1xf32>
    %102 = vector.broadcast %101 : vector<8x1xf32> to vector<8x8xf32>
    %103 = arith.subf %99, %102 : vector<8x8xf32>
    %104 = math.exp %103 : vector<8x8xf32>
    %cst_40 = arith.constant dense<0.000000e+00> : vector<8xf32>
    %105 = vector.multi_reduction <add>, %104, %cst_40 [1] : vector<8x8xf32> to vector<8xf32>
    %106 = vector.shape_cast %105 : vector<8xf32> to vector<8x1xf32>
    %107 = tpu.reciprocal %106 {approx = true} : vector<8x1xf32> -> vector<8x1xf32>
    %108 = vector.broadcast %107 : vector<8x1xf32> to vector<8x8xf32>
    %109 = arith.mulf %104, %108 : vector<8x8xf32>
    %110 = arith.truncf %109 : vector<8x8xf32> to vector<8x8xbf16>
    %cst_41 = arith.constant dense<0.000000e+00> : vector<8x16xf32>
    %111 = tpu.matmul %110, %93, %cst_41 {dimension_numbers = #tpu.dot_dimension_numbers<[1], [0], [0], [1], [0, 0, 1, 1], [], []>} : vector<8x8xbf16>, vector<8x16xbf16>, vector<8x16xf32> -> vector<8x16xf32>
    %c0_42 = arith.constant 0 : index
    %c0_43 = arith.constant 0 : index
    %112 = vector.load %arg30[%c0_42, %c0_43] : memref<8x32xf32, #tpu.memory_space<vmem>>, vector<8x16xf32>
    tpu.vector_store %arg30[%c0_42, %c0_43], %111 {strides = array<i32>} : memref<8x32xf32, #tpu.memory_space<vmem>>, vector<8x16xf32>,
    %113 = vector.extract_strided_slice %74 {offsets = [0, 16], sizes = [8, 16], strides = [1, 1]} : vector<8x96xf32> to vector<8x16xf32>
    %114 = arith.truncf %113 : vector<8x16xf32> to vector<8x16xbf16>
    %115 = vector.extract_strided_slice %74 {offsets = [0, 48], sizes = [8, 16], strides = [1, 1]} : vector<8x96xf32> to vector<8x16xf32>
    %116 = arith.truncf %115 : vector<8x16xf32> to vector<8x16xbf16>
    %117 = vector.extract_strided_slice %74 {offsets = [0, 80], sizes = [8, 16], strides = [1, 1]} : vector<8x96xf32> to vector<8x16xf32>
    %118 = arith.truncf %117 : vector<8x16xf32> to vector<8x16xbf16>
    %119 = tpu.transpose %116, [1, 0] : vector<8x16xbf16> -> vector<16x8xbf16>
    %cst_44 = arith.constant dense<0.000000e+00> : vector<8x8xf32>
    %120 = tpu.matmul %114, %119, %cst_44 {dimension_numbers = #tpu.dot_dimension_numbers<[1], [0], [0], [1], [0, 0, 1, 1], [], []>} : vector<8x16xbf16>, vector<16x8xbf16>, vector<8x8xf32> -> vector<8x8xf32>
    %cst_45 = arith.constant 2.500000e-01 : f32
    %121 = vector.broadcast %cst_45 : f32 to vector<8x8xf32>
    %122 = arith.mulf %120, %121 : vector<8x8xf32>
    %cst_46 = arith.constant -1.000000e+30 : f32
    %123 = vector.broadcast %cst_46 : f32 to vector<8x8xf32>
    %124 = arith.select %87, %122, %123 : vector<8x8xi1>, vector<8x8xf32>
    %cst_47 = arith.constant dense<0xFF800000> : vector<8xf32>
    %125 = vector.multi_reduction <maximumf>, %124, %cst_47 [1] : vector<8x8xf32> to vector<8xf32>
    %126 = vector.shape_cast %125 : vector<8xf32> to vector<8x1xf32>
    %127 = vector.broadcast %126 : vector<8x1xf32> to vector<8x8xf32>
    %128 = arith.subf %124, %127 : vector<8x8xf32>
    %129 = math.exp %128 : vector<8x8xf32>
    %cst_48 = arith.constant dense<0.000000e+00> : vector<8xf32>
    %130 = vector.multi_reduction <add>, %129, %cst_48 [1] : vector<8x8xf32> to vector<8xf32>
    %131 = vector.shape_cast %130 : vector<8xf32> to vector<8x1xf32>
    %132 = tpu.reciprocal %131 {approx = true} : vector<8x1xf32> -> vector<8x1xf32>
    %133 = vector.broadcast %132 : vector<8x1xf32> to vector<8x8xf32>
    %134 = arith.mulf %129, %133 : vector<8x8xf32>
    %135 = arith.truncf %134 : vector<8x8xf32> to vector<8x8xbf16>
    %cst_49 = arith.constant dense<0.000000e+00> : vector<8x16xf32>
    %136 = tpu.matmul %135, %118, %cst_49 {dimension_numbers = #tpu.dot_dimension_numbers<[1], [0], [0], [1], [0, 0, 1, 1], [], []>} : vector<8x8xbf16>, vector<8x16xbf16>, vector<8x16xf32> -> vector<8x16xf32>
    %c0_50 = arith.constant 0 : index
    %c16 = arith.constant 16 : index
    %137 = vector.load %arg30[%c0_50, %c16] : memref<8x32xf32, #tpu.memory_space<vmem>>, vector<8x16xf32>
    tpu.vector_store %arg30[%c0_50, %c16], %136 {strides = array<i32>} : memref<8x32xf32, #tpu.memory_space<vmem>>, vector<8x16xf32>,
    %c0_51 = arith.constant 0 : index
    %c0_52 = arith.constant 0 : index
    %138 = vector.load %arg30[%c0_51, %c0_52] : memref<8x32xf32, #tpu.memory_space<vmem>>, vector<8x32xf32>
    %c0_53 = arith.constant 0 : index
    %c0_54 = arith.constant 0 : index
    %139 = vector.load %arg11[%c0_53, %c0_54] : memref<32x32xbf16, #tpu.memory_space<vmem>>, vector<32x32xbf16>
    %140 = arith.truncf %138 : vector<8x32xf32> to vector<8x32xbf16>
    %cst_55 = arith.constant dense<0.000000e+00> : vector<8x32xf32>
    %141 = tpu.matmul %140, %139, %cst_55 {dimension_numbers = #tpu.dot_dimension_numbers<[1], [0], [0], [1], [0, 0, 1, 1], [], []>} : vector<8x32xbf16>, vector<32x32xbf16>, vector<8x32xf32> -> vector<8x32xf32>
    %c0_56 = arith.constant 0 : index
    %c0_57 = arith.constant 0 : index
    %142 = vector.load %arg12[%c0_56, %c0_57] : memref<1x32xf32, #tpu.memory_space<vmem>>, vector<1x32xf32>
    %143 = vector.broadcast %142 : vector<1x32xf32> to vector<8x32xf32>
    %144 = arith.addf %141, %143 : vector<8x32xf32>
    %145 = arith.addf %144, %47 : vector<8x32xf32>
    %c0_58 = arith.constant 0 : index
    %c0_59 = arith.constant 0 : index
    %146 = vector.load %arg13[%c0_58, %c0_59] : memref<1x32xf32, #tpu.memory_space<vmem>>, vector<1x32xf32>
    %c0_60 = arith.constant 0 : index
    %c0_61 = arith.constant 0 : index
    %147 = vector.load %arg14[%c0_60, %c0_61] : memref<1x32xf32, #tpu.memory_space<vmem>>, vector<1x32xf32>
    %cst_62 = arith.constant dense<0.000000e+00> : vector<8xf32>
    %148 = vector.multi_reduction <add>, %145, %cst_62 [1] : vector<8x32xf32> to vector<8xf32>
    %149 = vector.shape_cast %148 : vector<8xf32> to vector<8x1xf32>
    %cst_63 = arith.constant 3.200000e+01 : f32
    %150 = vector.broadcast %cst_63 : f32 to vector<8x1xf32>
    %151 = arith.divf %149, %150 : vector<8x1xf32>
    %152 = vector.broadcast %151 : vector<8x1xf32> to vector<8x32xf32>
    %153 = arith.subf %145, %152 : vector<8x32xf32>
    %154 = arith.mulf %153, %153 : vector<8x32xf32>
    %cst_64 = arith.constant dense<0.000000e+00> : vector<8xf32>
    %155 = vector.multi_reduction <add>, %154, %cst_64 [1] : vector<8x32xf32> to vector<8xf32>
    %156 = vector.shape_cast %155 : vector<8xf32> to vector<8x1xf32>
    %cst_65 = arith.constant 3.200000e+01 : f32
    %157 = vector.broadcast %cst_65 : f32 to vector<8x1xf32>
    %158 = arith.divf %156, %157 : vector<8x1xf32>
    %159 = vector.broadcast %151 : vector<8x1xf32> to vector<8x32xf32>
    %160 = arith.subf %145, %159 : vector<8x32xf32>
    %cst_66 = arith.constant 9.99999974E-6 : f32
    %161 = vector.broadcast %cst_66 : f32 to vector<8x1xf32>
    %162 = arith.addf %158, %161 : vector<8x1xf32>
    %163 = math.rsqrt %162 : vector<8x1xf32>
    %164 = vector.broadcast %163 : vector<8x1xf32> to vector<8x32xf32>
    %165 = arith.mulf %160, %164 : vector<8x32xf32>
    %166 = vector.broadcast %146 : vector<1x32xf32> to vector<8x32xf32>
    %167 = arith.mulf %165, %166 : vector<8x32xf32>
    %168 = vector.broadcast %147 : vector<1x32xf32> to vector<8x32xf32>
    %169 = arith.addf %167, %168 : vector<8x32xf32>
    %c0_67 = arith.constant 0 : index
    %c0_68 = arith.constant 0 : index
    %170 = vector.load %arg15[%c0_67, %c0_68] : memref<32x128xbf16, #tpu.memory_space<vmem>>, vector<32x128xbf16>
    %171 = arith.truncf %169 : vector<8x32xf32> to vector<8x32xbf16>
    %cst_69 = arith.constant dense<0.000000e+00> : vector<8x128xf32>
    %172 = tpu.matmul %171, %170, %cst_69 {dimension_numbers = #tpu.dot_dimension_numbers<[1], [0], [0], [1], [0, 0, 1, 1], [], []>} : vector<8x32xbf16>, vector<32x128xbf16>, vector<8x128xf32> -> vector<8x128xf32>
    %c0_70 = arith.constant 0 : index
    %c0_71 = arith.constant 0 : index
    %173 = vector.load %arg16[%c0_70, %c0_71] : memref<1x128xf32, #tpu.memory_space<vmem>>, vector<1x128xf32>
    %174 = vector.broadcast %173 : vector<1x128xf32> to vector<8x128xf32>
    %175 = arith.addf %172, %174 : vector<8x128xf32>
    %176 = vector.extract_strided_slice %175 {offsets = [0, 0], sizes = [8, 64], strides = [1, 1]} : vector<8x128xf32> to vector<8x64xf32>
    %177 = vector.extract_strided_slice %175 {offsets = [0, 64], sizes = [8, 64], strides = [1, 1]} : vector<8x128xf32> to vector<8x64xf32>
    %cst_72 = arith.constant 0.000000e+00 : f32
    %178 = vector.broadcast %cst_72 : f32 to vector<8x64xf32>
    %179 = arith.subf %178, %177 : vector<8x64xf32>
    %180 = math.exp %179 : vector<8x64xf32>
    %cst_73 = arith.constant 1.000000e+00 : f32
    %181 = vector.broadcast %cst_73 : f32 to vector<8x64xf32>
    %182 = arith.addf %181, %180 : vector<8x64xf32>
    %cst_74 = arith.constant 1.000000e+00 : f32
    %183 = vector.broadcast %cst_74 : f32 to vector<8x64xf32>
    %184 = arith.divf %183, %182 : vector<8x64xf32>
    %185 = arith.mulf %176, %184 : vector<8x64xf32>
    %cst_75 = arith.constant 0.000000e+00 : f32
    %186 = vector.broadcast %cst_75 : f32 to vector<6x64xf32>
    %c0_76 = arith.constant 0 : index
    %c0_77 = arith.constant 0 : index
    %187 = vector.load %arg31[%c0_76, %c0_77] : memref<14x64xf32, #tpu.memory_space<vmem>>, vector<6x64xf32>
    tpu.vector_store %arg31[%c0_76, %c0_77], %186 {strides = array<i32>} : memref<14x64xf32, #tpu.memory_space<vmem>>, vector<6x64xf32>,
    %c6 = arith.constant 6 : index
    %c0_78 = arith.constant 0 : index
    %188 = vector.load %arg31[%c6, %c0_78] : memref<14x64xf32, #tpu.memory_space<vmem>>, vector<8x64xf32>
    tpu.vector_store %arg31[%c6, %c0_78], %185 {strides = array<i32>} : memref<14x64xf32, #tpu.memory_space<vmem>>, vector<8x64xf32>,
    %c0_79 = arith.constant 0 : index
    %c0_80 = arith.constant 0 : index
    %189 = vector.load %arg31[%c0_79, %c0_80] : memref<14x64xf32, #tpu.memory_space<vmem>>, vector<14x64xf32>
    %c0_81 = arith.constant 0 : index
    %c0_82 = arith.constant 0 : index
    %190 = vector.load %arg17[%c0_81, %c0_82] : memref<7x64xf32, #tpu.memory_space<vmem>>, vector<7x64xf32>
    %cst_83 = arith.constant 0.000000e+00 : f32
    %191 = vector.broadcast %cst_83 : f32 to vector<8x64xf32>
    %192 = vector.extract_strided_slice %189 {offsets = [0, 0], sizes = [8, 64], strides = [1, 1]} : vector<14x64xf32> to vector<8x64xf32>
    %193 = vector.extract_strided_slice %190 {offsets = [0, 0], sizes = [1, 64], strides = [1, 1]} : vector<7x64xf32> to vector<1x64xf32>
    %194 = vector.broadcast %193 : vector<1x64xf32> to vector<8x64xf32>
    %195 = arith.mulf %192, %194 : vector<8x64xf32>
    %196 = arith.addf %191, %195 : vector<8x64xf32>
    %197 = vector.extract_strided_slice %189 {offsets = [1, 0], sizes = [8, 64], strides = [1, 1]} : vector<14x64xf32> to vector<8x64xf32>
    %198 = vector.extract_strided_slice %190 {offsets = [1, 0], sizes = [1, 64], strides = [1, 1]} : vector<7x64xf32> to vector<1x64xf32>
    %199 = vector.broadcast %198 : vector<1x64xf32> to vector<8x64xf32>
    %200 = arith.mulf %197, %199 : vector<8x64xf32>
    %201 = arith.addf %196, %200 : vector<8x64xf32>
    %202 = vector.extract_strided_slice %189 {offsets = [2, 0], sizes = [8, 64], strides = [1, 1]} : vector<14x64xf32> to vector<8x64xf32>
    %203 = vector.extract_strided_slice %190 {offsets = [2, 0], sizes = [1, 64], strides = [1, 1]} : vector<7x64xf32> to vector<1x64xf32>
    %204 = vector.broadcast %203 : vector<1x64xf32> to vector<8x64xf32>
    %205 = arith.mulf %202, %204 : vector<8x64xf32>
    %206 = arith.addf %201, %205 : vector<8x64xf32>
    %207 = vector.extract_strided_slice %189 {offsets = [3, 0], sizes = [8, 64], strides = [1, 1]} : vector<14x64xf32> to vector<8x64xf32>
    %208 = vector.extract_strided_slice %190 {offsets = [3, 0], sizes = [1, 64], strides = [1, 1]} : vector<7x64xf32> to vector<1x64xf32>
    %209 = vector.broadcast %208 : vector<1x64xf32> to vector<8x64xf32>
    %210 = arith.mulf %207, %209 : vector<8x64xf32>
    %211 = arith.addf %206, %210 : vector<8x64xf32>
    %212 = vector.extract_strided_slice %189 {offsets = [4, 0], sizes = [8, 64], strides = [1, 1]} : vector<14x64xf32> to vector<8x64xf32>
    %213 = vector.extract_strided_slice %190 {offsets = [4, 0], sizes = [1, 64], strides = [1, 1]} : vector<7x64xf32> to vector<1x64xf32>
    %214 = vector.broadcast %213 : vector<1x64xf32> to vector<8x64xf32>
    %215 = arith.mulf %212, %214 : vector<8x64xf32>
    %216 = arith.addf %211, %215 : vector<8x64xf32>
    %217 = vector.extract_strided_slice %189 {offsets = [5, 0], sizes = [8, 64], strides = [1, 1]} : vector<14x64xf32> to vector<8x64xf32>
    %218 = vector.extract_strided_slice %190 {offsets = [5, 0], sizes = [1, 64], strides = [1, 1]} : vector<7x64xf32> to vector<1x64xf32>
    %219 = vector.broadcast %218 : vector<1x64xf32> to vector<8x64xf32>
    %220 = arith.mulf %217, %219 : vector<8x64xf32>
    %221 = arith.addf %216, %220 : vector<8x64xf32>
    %222 = vector.extract_strided_slice %189 {offsets = [6, 0], sizes = [8, 64], strides = [1, 1]} : vector<14x64xf32> to vector<8x64xf32>
    %223 = vector.extract_strided_slice %190 {offsets = [6, 0], sizes = [1, 64], strides = [1, 1]} : vector<7x64xf32> to vector<1x64xf32>
    %224 = vector.broadcast %223 : vector<1x64xf32> to vector<8x64xf32>
    %225 = arith.mulf %222, %224 : vector<8x64xf32>
    %226 = arith.addf %221, %225 : vector<8x64xf32>
    %c0_84 = arith.constant 0 : index
    %c0_85 = arith.constant 0 : index
    %227 = vector.load %arg18[%c0_84, %c0_85] : memref<1x64xf32, #tpu.memory_space<vmem>>, vector<1x64xf32>
    %228 = vector.broadcast %227 : vector<1x64xf32> to vector<8x64xf32>
    %229 = arith.addf %226, %228 : vector<8x64xf32>
    %cst_86 = arith.constant 0.000000e+00 : f32
    %230 = vector.broadcast %cst_86 : f32 to vector<8x64xf32>
    %231 = arith.subf %230, %229 : vector<8x64xf32>
    %232 = math.exp %231 : vector<8x64xf32>
    %cst_87 = arith.constant 1.000000e+00 : f32
    %233 = vector.broadcast %cst_87 : f32 to vector<8x64xf32>
    %234 = arith.addf %233, %232 : vector<8x64xf32>
    %cst_88 = arith.constant 1.000000e+00 : f32
    %235 = vector.broadcast %cst_88 : f32 to vector<8x64xf32>
    %236 = arith.divf %235, %234 : vector<8x64xf32>
    %237 = arith.mulf %229, %236 : vector<8x64xf32>
    %c0_89 = arith.constant 0 : index
    %c0_90 = arith.constant 0 : index
    %238 = vector.load %arg19[%c0_89, %c0_90] : memref<64x32xbf16, #tpu.memory_space<vmem>>, vector<64x32xbf16>
    %239 = arith.truncf %237 : vector<8x64xf32> to vector<8x64xbf16>
    %cst_91 = arith.constant dense<0.000000e+00> : vector<8x32xf32>
    %240 = tpu.matmul %239, %238, %cst_91 {dimension_numbers = #tpu.dot_dimension_numbers<[1], [0], [0], [1], [0, 0, 1, 1], [], []>} : vector<8x64xbf16>, vector<64x32xbf16>, vector<8x32xf32> -> vector<8x32xf32>
    %c0_92 = arith.constant 0 : index
    %c0_93 = arith.constant 0 : index
    %241 = vector.load %arg20[%c0_92, %c0_93] : memref<1x32xf32, #tpu.memory_space<vmem>>, vector<1x32xf32>
    %242 = vector.broadcast %241 : vector<1x32xf32> to vector<8x32xf32>
    %243 = arith.addf %240, %242 : vector<8x32xf32>
    %244 = arith.addf %243, %145 : vector<8x32xf32>
    %c0_94 = arith.constant 0 : index
    %c0_95 = arith.constant 0 : index
    %245 = vector.load %arg21[%c0_94, %c0_95] : memref<1x32xf32, #tpu.memory_space<vmem>>, vector<1x32xf32>
    %c0_96 = arith.constant 0 : index
    %c0_97 = arith.constant 0 : index
    %246 = vector.load %arg22[%c0_96, %c0_97] : memref<1x32xf32, #tpu.memory_space<vmem>>, vector<1x32xf32>
    %cst_98 = arith.constant dense<0.000000e+00> : vector<8xf32>
    %247 = vector.multi_reduction <add>, %244, %cst_98 [1] : vector<8x32xf32> to vector<8xf32>
    %248 = vector.shape_cast %247 : vector<8xf32> to vector<8x1xf32>
    %cst_99 = arith.constant 3.200000e+01 : f32
    %249 = vector.broadcast %cst_99 : f32 to vector<8x1xf32>
    %250 = arith.divf %248, %249 : vector<8x1xf32>
    %251 = vector.broadcast %250 : vector<8x1xf32> to vector<8x32xf32>
    %252 = arith.subf %244, %251 : vector<8x32xf32>
    %253 = arith.mulf %252, %252 : vector<8x32xf32>
    %cst_100 = arith.constant dense<0.000000e+00> : vector<8xf32>
    %254 = vector.multi_reduction <add>, %253, %cst_100 [1] : vector<8x32xf32> to vector<8xf32>
    %255 = vector.shape_cast %254 : vector<8xf32> to vector<8x1xf32>
    %cst_101 = arith.constant 3.200000e+01 : f32
    %256 = vector.broadcast %cst_101 : f32 to vector<8x1xf32>
    %257 = arith.divf %255, %256 : vector<8x1xf32>
    %258 = vector.broadcast %250 : vector<8x1xf32> to vector<8x32xf32>
    %259 = arith.subf %244, %258 : vector<8x32xf32>
    %cst_102 = arith.constant 9.99999974E-6 : f32
    %260 = vector.broadcast %cst_102 : f32 to vector<8x1xf32>
    %261 = arith.addf %257, %260 : vector<8x1xf32>
    %262 = math.rsqrt %261 : vector<8x1xf32>
    %263 = vector.broadcast %262 : vector<8x1xf32> to vector<8x32xf32>
    %264 = arith.mulf %259, %263 : vector<8x32xf32>
    %265 = vector.broadcast %245 : vector<1x32xf32> to vector<8x32xf32>
    %266 = arith.mulf %264, %265 : vector<8x32xf32>
    %267 = vector.broadcast %246 : vector<1x32xf32> to vector<8x32xf32>
    %268 = arith.addf %266, %267 : vector<8x32xf32>
    %c0_103 = arith.constant 0 : index
    %c0_104 = arith.constant 0 : index
    %269 = vector.load %arg23[%c0_103, %c0_104] : memref<32x128xbf16, #tpu.memory_space<vmem>>, vector<32x128xbf16>
    %270 = arith.truncf %268 : vector<8x32xf32> to vector<8x32xbf16>
    %cst_105 = arith.constant dense<0.000000e+00> : vector<8x128xf32>
    %271 = tpu.matmul %270, %269, %cst_105 {dimension_numbers = #tpu.dot_dimension_numbers<[1], [0], [0], [1], [0, 0, 1, 1], [], []>} : vector<8x32xbf16>, vector<32x128xbf16>, vector<8x128xf32> -> vector<8x128xf32>
    %c0_106 = arith.constant 0 : index
    %c0_107 = arith.constant 0 : index
    %272 = vector.load %arg24[%c0_106, %c0_107] : memref<1x128xf32, #tpu.memory_space<vmem>>, vector<1x128xf32>
    %273 = vector.broadcast %272 : vector<1x128xf32> to vector<8x128xf32>
    %274 = arith.addf %271, %273 : vector<8x128xf32>
    %cst_108 = arith.constant 0.000000e+00 : f32
    %275 = vector.broadcast %cst_108 : f32 to vector<8x128xf32>
    %276 = arith.subf %275, %274 : vector<8x128xf32>
    %277 = math.exp %276 : vector<8x128xf32>
    %cst_109 = arith.constant 1.000000e+00 : f32
    %278 = vector.broadcast %cst_109 : f32 to vector<8x128xf32>
    %279 = arith.addf %278, %277 : vector<8x128xf32>
    %cst_110 = arith.constant 1.000000e+00 : f32
    %280 = vector.broadcast %cst_110 : f32 to vector<8x128xf32>
    %281 = arith.divf %280, %279 : vector<8x128xf32>
    %282 = arith.mulf %274, %281 : vector<8x128xf32>
    %c0_111 = arith.constant 0 : index
    %c0_112 = arith.constant 0 : index
    %283 = vector.load %arg25[%c0_111, %c0_112] : memref<128x32xbf16, #tpu.memory_space<vmem>>, vector<128x32xbf16>
    %284 = arith.truncf %282 : vector<8x128xf32> to vector<8x128xbf16>
    %cst_113 = arith.constant dense<0.000000e+00> : vector<8x32xf32>
    %285 = tpu.matmul %284, %283, %cst_113 {dimension_numbers = #tpu.dot_dimension_numbers<[1], [0], [0], [1], [0, 0, 1, 1], [], []>} : vector<8x128xbf16>, vector<128x32xbf16>, vector<8x32xf32> -> vector<8x32xf32>
    %c0_114 = arith.constant 0 : index
    %c0_115 = arith.constant 0 : index
    %286 = vector.load %arg26[%c0_114, %c0_115] : memref<1x32xf32, #tpu.memory_space<vmem>>, vector<1x32xf32>
    %287 = vector.broadcast %286 : vector<1x32xf32> to vector<8x32xf32>
    %288 = arith.addf %285, %287 : vector<8x32xf32>
    %cst_116 = arith.constant 5.000000e-01 : f32
    %289 = vector.broadcast %cst_116 : f32 to vector<8x32xf32>
    %290 = arith.mulf %289, %288 : vector<8x32xf32>
    %291 = arith.addf %290, %244 : vector<8x32xf32>
    %c0_117 = arith.constant 0 : index
    %c0_118 = arith.constant 0 : index
    %292 = vector.load %arg27[%c0_117, %c0_118] : memref<1x32xf32, #tpu.memory_space<vmem>>, vector<1x32xf32>
    %c0_119 = arith.constant 0 : index
    %c0_120 = arith.constant 0 : index
    %293 = vector.load %arg28[%c0_119, %c0_120] : memref<1x32xf32, #tpu.memory_space<vmem>>, vector<1x32xf32>
    %cst_121 = arith.constant dense<0.000000e+00> : vector<8xf32>
    %294 = vector.multi_reduction <add>, %291, %cst_121 [1] : vector<8x32xf32> to vector<8xf32>
    %295 = vector.shape_cast %294 : vector<8xf32> to vector<8x1xf32>
    %cst_122 = arith.constant 3.200000e+01 : f32
    %296 = vector.broadcast %cst_122 : f32 to vector<8x1xf32>
    %297 = arith.divf %295, %296 : vector<8x1xf32>
    %298 = vector.broadcast %297 : vector<8x1xf32> to vector<8x32xf32>
    %299 = arith.subf %291, %298 : vector<8x32xf32>
    %300 = arith.mulf %299, %299 : vector<8x32xf32>
    %cst_123 = arith.constant dense<0.000000e+00> : vector<8xf32>
    %301 = vector.multi_reduction <add>, %300, %cst_123 [1] : vector<8x32xf32> to vector<8xf32>
    %302 = vector.shape_cast %301 : vector<8xf32> to vector<8x1xf32>
    %cst_124 = arith.constant 3.200000e+01 : f32
    %303 = vector.broadcast %cst_124 : f32 to vector<8x1xf32>
    %304 = arith.divf %302, %303 : vector<8x1xf32>
    %305 = vector.broadcast %297 : vector<8x1xf32> to vector<8x32xf32>
    %306 = arith.subf %291, %305 : vector<8x32xf32>
    %cst_125 = arith.constant 9.99999974E-6 : f32
    %307 = vector.broadcast %cst_125 : f32 to vector<8x1xf32>
    %308 = arith.addf %304, %307 : vector<8x1xf32>
    %309 = math.rsqrt %308 : vector<8x1xf32>
    %310 = vector.broadcast %309 : vector<8x1xf32> to vector<8x32xf32>
    %311 = arith.mulf %306, %310 : vector<8x32xf32>
    %312 = vector.broadcast %292 : vector<1x32xf32> to vector<8x32xf32>
    %313 = arith.mulf %311, %312 : vector<8x32xf32>
    %314 = vector.broadcast %293 : vector<1x32xf32> to vector<8x32xf32>
    %315 = arith.addf %313, %314 : vector<8x32xf32>
    %c0_126 = arith.constant 0 : index
    %c0_127 = arith.constant 0 : index
    %c0_128 = arith.constant 0 : index
    %316 = vector.load %arg29[%c0_126, %c0_127, %c0_128] : memref<1x8x32xf32, #tpu.memory_space<vmem>>, vector<1x8x32xf32>
    %317 = vector.shape_cast %316 : vector<1x8x32xf32> to vector<8x32xf32>
    %318 = vector.shape_cast %315 : vector<8x32xf32> to vector<1x8x32xf32>
    tpu.vector_store %arg29[%c0_126, %c0_127, %c0_128], %318 {strides = array<i32>} : memref<1x8x32xf32, #tpu.memory_space<vmem>>, vector<1x8x32xf32>,
    return
  }
  func.func @transform_0(%arg0: i32) -> (i32, i32, i32) {
    %c0_i32 = arith.constant 0 : i32
    %c0_i32_0 = arith.constant 0 : i32
    %c0_i32_1 = arith.constant 0 : i32
    return %arg0, %c0_i32, %c0_i32_0 : i32, i32, i32
  }
  func.func @transform_1(%arg0: i32) -> (i32, i32) {
    %c0_i32 = arith.constant 0 : i32
    %c0_i32_0 = arith.constant 0 : i32
    %c0_i32_1 = arith.constant 0 : i32
    return %c0_i32, %c0_i32_0 : i32, i32
  }
  func.func @transform_2(%arg0: i32) -> (i32, i32) {
    %c0_i32 = arith.constant 0 : i32
    %c0_i32_0 = arith.constant 0 : i32
    %c0_i32_1 = arith.constant 0 : i32
    return %c0_i32, %c0_i32_0 : i32, i32
  }
  func.func @transform_3(%arg0: i32) -> (i32, i32) {
    %c0_i32 = arith.constant 0 : i32
    %c0_i32_0 = arith.constant 0 : i32
    %c0_i32_1 = arith.constant 0 : i32
    return %c0_i32, %c0_i32_0 : i32, i32
  }
  func.func @transform_4(%arg0: i32) -> (i32, i32) {
    %c0_i32 = arith.constant 0 : i32
    %c0_i32_0 = arith.constant 0 : i32
    %c0_i32_1 = arith.constant 0 : i32
    return %c0_i32, %c0_i32_0 : i32, i32
  }
  func.func @transform_5(%arg0: i32) -> (i32, i32) {
    %c0_i32 = arith.constant 0 : i32
    %c0_i32_0 = arith.constant 0 : i32
    %c0_i32_1 = arith.constant 0 : i32
    return %c0_i32, %c0_i32_0 : i32, i32
  }
  func.func @transform_6(%arg0: i32) -> (i32, i32) {
    %c0_i32 = arith.constant 0 : i32
    %c0_i32_0 = arith.constant 0 : i32
    %c0_i32_1 = arith.constant 0 : i32
    return %c0_i32, %c0_i32_0 : i32, i32
  }
  func.func @transform_7(%arg0: i32) -> (i32, i32) {
    %c0_i32 = arith.constant 0 : i32
    %c0_i32_0 = arith.constant 0 : i32
    %c0_i32_1 = arith.constant 0 : i32
    return %c0_i32, %c0_i32_0 : i32, i32
  }
  func.func @transform_8(%arg0: i32) -> (i32, i32) {
    %c0_i32 = arith.constant 0 : i32
    %c0_i32_0 = arith.constant 0 : i32
    %c0_i32_1 = arith.constant 0 : i32
    return %c0_i32, %c0_i32_0 : i32, i32
  }
  func.func @transform_9(%arg0: i32) -> (i32, i32) {
    %c0_i32 = arith.constant 0 : i32
    %c0_i32_0 = arith.constant 0 : i32
    %c0_i32_1 = arith.constant 0 : i32
    return %c0_i32, %c0_i32_0 : i32, i32
  }
  func.func @transform_10(%arg0: i32) -> (i32, i32) {
    %c0_i32 = arith.constant 0 : i32
    %c0_i32_0 = arith.constant 0 : i32
    %c0_i32_1 = arith.constant 0 : i32
    return %c0_i32, %c0_i32_0 : i32, i32
  }
  func.func @transform_11(%arg0: i32) -> (i32, i32) {
    %c0_i32 = arith.constant 0 : i32
    %c0_i32_0 = arith.constant 0 : i32
    %c0_i32_1 = arith.constant 0 : i32
    return %c0_i32, %c0_i32_0 : i32, i32
  }
  func.func @transform_12(%arg0: i32) -> (i32, i32) {
    %c0_i32 = arith.constant 0 : i32
    %c0_i32_0 = arith.constant 0 : i32
    %c0_i32_1 = arith.constant 0 : i32
    return %c0_i32, %c0_i32_0 : i32, i32
  }
  func.func @transform_13(%arg0: i32) -> (i32, i32) {
    %c0_i32 = arith.constant 0 : i32
    %c0_i32_0 = arith.constant 0 : i32
    %c0_i32_1 = arith.constant 0 : i32
    return %c0_i32, %c0_i32_0 : i32, i32
  }
  func.func @transform_14(%arg0: i32) -> (i32, i32) {
    %c0_i32 = arith.constant 0 : i32
    %c0_i32_0 = arith.constant 0 : i32
    %c0_i32_1 = arith.constant 0 : i32
    return %c0_i32, %c0_i32_0 : i32, i32
  }
  func.func @transform_15(%arg0: i32) -> (i32, i32) {
    %c0_i32 = arith.constant 0 : i32
    %c0_i32_0 = arith.constant 0 : i32
    %c0_i32_1 = arith.constant 0 : i32
    return %c0_i32, %c0_i32_0 : i32, i32
  }
  func.func @transform_16(%arg0: i32) -> (i32, i32) {
    %c0_i32 = arith.constant 0 : i32
    %c0_i32_0 = arith.constant 0 : i32
    %c0_i32_1 = arith.constant 0 : i32
    return %c0_i32, %c0_i32_0 : i32, i32
  }
  func.func @transform_17(%arg0: i32) -> (i32, i32) {
    %c0_i32 = arith.constant 0 : i32
    %c0_i32_0 = arith.constant 0 : i32
    %c0_i32_1 = arith.constant 0 : i32
    return %c0_i32, %c0_i32_0 : i32, i32
  }
  func.func @transform_18(%arg0: i32) -> (i32, i32) {
    %c0_i32 = arith.constant 0 : i32
    %c0_i32_0 = arith.constant 0 : i32
    %c0_i32_1 = arith.constant 0 : i32
    return %c0_i32, %c0_i32_0 : i32, i32
  }
  func.func @transform_19(%arg0: i32) -> (i32, i32) {
    %c0_i32 = arith.constant 0 : i32
    %c0_i32_0 = arith.constant 0 : i32
    %c0_i32_1 = arith.constant 0 : i32
    return %c0_i32, %c0_i32_0 : i32, i32
  }
  func.func @transform_20(%arg0: i32) -> (i32, i32) {
    %c0_i32 = arith.constant 0 : i32
    %c0_i32_0 = arith.constant 0 : i32
    %c0_i32_1 = arith.constant 0 : i32
    return %c0_i32, %c0_i32_0 : i32, i32
  }
  func.func @transform_21(%arg0: i32) -> (i32, i32) {
    %c0_i32 = arith.constant 0 : i32
    %c0_i32_0 = arith.constant 0 : i32
    %c0_i32_1 = arith.constant 0 : i32
    return %c0_i32, %c0_i32_0 : i32, i32
  }
  func.func @transform_22(%arg0: i32) -> (i32, i32) {
    %c0_i32 = arith.constant 0 : i32
    %c0_i32_0 = arith.constant 0 : i32
    %c0_i32_1 = arith.constant 0 : i32
    return %c0_i32, %c0_i32_0 : i32, i32
  }
  func.func @transform_23(%arg0: i32) -> (i32, i32) {
    %c0_i32 = arith.constant 0 : i32
    %c0_i32_0 = arith.constant 0 : i32
    %c0_i32_1 = arith.constant 0 : i32
    return %c0_i32, %c0_i32_0 : i32, i32
  }
  func.func @transform_24(%arg0: i32) -> (i32, i32) {
    %c0_i32 = arith.constant 0 : i32
    %c0_i32_0 = arith.constant 0 : i32
    %c0_i32_1 = arith.constant 0 : i32
    return %c0_i32, %c0_i32_0 : i32, i32
  }
  func.func @transform_25(%arg0: i32) -> (i32, i32) {
    %c0_i32 = arith.constant 0 : i32
    %c0_i32_0 = arith.constant 0 : i32
    %c0_i32_1 = arith.constant 0 : i32
    return %c0_i32, %c0_i32_0 : i32, i32
  }
  func.func @transform_26(%arg0: i32) -> (i32, i32) {
    %c0_i32 = arith.constant 0 : i32
    %c0_i32_0 = arith.constant 0 : i32
    %c0_i32_1 = arith.constant 0 : i32
    return %c0_i32, %c0_i32_0 : i32, i32
  }
  func.func @transform_27(%arg0: i32) -> (i32, i32) {
    %c0_i32 = arith.constant 0 : i32
    %c0_i32_0 = arith.constant 0 : i32
    %c0_i32_1 = arith.constant 0 : i32
    return %c0_i32, %c0_i32_0 : i32, i32
  }
  func.func @transform_28(%arg0: i32) -> (i32, i32, i32) {
    %c0_i32 = arith.constant 0 : i32
    %c0_i32_0 = arith.constant 0 : i32
    %c0_i32_1 = arith.constant 0 : i32
    return %arg0, %c0_i32, %c0_i32_0 : i32, i32, i32
  }
}

</mosaic_0001>

<bundles_post_ra>
// kernel: tpu_custom_call.1
= control target key start
LH: loop header
LB: loop body
LE: loop exit
PB: predicated region body
PF: predicated region fallthrough
CT: control target
= control target key end

     0   :  { %s2573_s0 = inlined_call_operand.vmem [shape: f32[2,8,32], index: 0, kind: input, shape index: {}]   ;;  %s2574_s1 = inlined_call_operand.vmem [shape: f32[1,32], index: 1, kind: input, shape index: {}]   ;;  %s2575_s2 = inlined_call_operand.vmem [shape: f32[1,32], index: 2, kind: input, shape index: {}]   ;;  %s2576_s3 = inlined_call_operand.vmem [shape: bf16[32,128], index: 3, kind: input, shape index: {}]   ;;  %s2577_s4 = inlined_call_operand.vmem [shape: f32[1,128], index: 4, kind: input, shape index: {}]   ;;  %s2578_s5 = inlined_call_operand.vmem [shape: bf16[128,32], index: 5, kind: input, shape index: {}]   ;;  %s2579_s6 = inlined_call_operand.vmem [shape: f32[1,32], index: 6, kind: input, shape index: {}]   ;;  %s2580_s7 = inlined_call_operand.vmem [shape: f32[1,32], index: 7, kind: input, shape index: {}]   ;;  %s2581_s8 = inlined_call_operand.vmem [shape: f32[1,32], index: 8, kind: input, shape index: {}]   ;;  %s2582_s9 = inlined_call_operand.vmem [shape: bf16[32,96], index: 9, kind: input, shape index: {}]   ;;  %s2583_s10 = inlined_call_operand.vmem [shape: bf16[32,32], index: 10, kind: input, shape index: {}]   ;;  %s2584_s11 = inlined_call_operand.vmem [shape: f32[1,32], index: 11, kind: input, shape index: {}]   ;;  %s2585_s12 = inlined_call_operand.vmem [shape: f32[1,32], index: 12, kind: input, shape index: {}]   ;;  %s2586_s13 = inlined_call_operand.vmem [shape: f32[1,32], index: 13, kind: input, shape index: {}]   ;;  %s2587_s14 = inlined_call_operand.vmem [shape: bf16[32,128], index: 14, kind: input, shape index: {}]   ;;  %s2588_s15 = inlined_call_operand.vmem [shape: f32[1,128], index: 15, kind: input, shape index: {}]   ;;  %s2589_s16 = inlined_call_operand.vmem [shape: f32[7,64], index: 16, kind: input, shape index: {}]   ;;  %s2590_s17 = inlined_call_operand.vmem [shape: f32[1,64], index: 17, kind: input, shape index: {}]   ;;  %s2591_s18 = inlined_call_operand.vmem [shape: bf16[64,32], index: 18, kind: input, shape index: {}]   ;;  %s2592_s19 = inlined_call_operand.vmem [shape: f32[1,32], index: 19, kind: input, shape index: {}]   ;;  %s2593_s20 = inlined_call_operand.vmem [shape: f32[1,32], index: 20, kind: input, shape index: {}]   ;;  %s2594_s21 = inlined_call_operand.vmem [shape: f32[1,32], index: 21, kind: input, shape index: {}]   ;;  %s2595_s22 = inlined_call_operand.vmem [shape: bf16[32,128], index: 22, kind: input, shape index: {}]   ;;  %s2596_s23 = inlined_call_operand.vmem [shape: f32[1,128], index: 23, kind: input, shape index: {}]   ;;  %s2597_s24 = inlined_call_operand.vmem [shape: bf16[128,32], index: 24, kind: input, shape index: {}]   ;;  %s2598_s25 = inlined_call_operand.vmem [shape: f32[1,32], index: 25, kind: input, shape index: {}]   ;;  %s2599_s26 = inlined_call_operand.vmem [shape: f32[1,32], index: 26, kind: input, shape index: {}]   ;;  %s2600_s27 = inlined_call_operand.vmem [shape: f32[1,32], index: 27, kind: input, shape index: {}]   ;;  %s2601_s28 = inlined_call_operand.hbm [shape: f32[2,8,32], index: 28, kind: output, shape index: {}]  }
   0x1   :  { %2616 = sst [smem:[#allocation13_spill]] %s2573_s0 }
   0x2   :  { %2617 = sst [smem:[#allocation14_spill]] %s2574_s1 }
   0x3   :  { %2618 = sst [smem:[#allocation15_spill]] %s2575_s2 }
   0x4   :  { %2619 = sst [smem:[#allocation16_spill]] %s2576_s3 }
   0x5   :  { %2620 = sst [smem:[#allocation17_spill]] %s2577_s4 }
   0x6   :  { %2621 = sst [smem:[#allocation18_spill]] %s2578_s5 }
   0x7   :  { %2622 = sst [smem:[#allocation19_spill]] %s2579_s6 }
   0x8   :  { %2623 = sst [smem:[#allocation20_spill]] %s2580_s7 }
   0x9   :  { %2624 = sst [smem:[#allocation21_spill]] %s2581_s8 }
   0xa   :  { %2625 = sst [smem:[#allocation22_spill]] %s2582_s9 }
   0xb   :  { %2626 = sst [smem:[#allocation23_spill]] %s2583_s10 }
   0xc   :  { %2627 = sst [smem:[#allocation24_spill]] %s2584_s11 }
   0xd   :  { %2628 = sst [smem:[#allocation25_spill]] %s2585_s12 }
   0xe   :  { %2629 = sst [smem:[#allocation26_spill]] %s2586_s13 }
   0xf   :  { %33 = vsyncpa [#allocation5], 0 }
  0x10   :  { %35 = vsyncpa [#allocation5 + $0x1], 0  ;;  %s2279_s8 = smov 0   ;;  %s2281_s5 = smov 0  }
  0x11   :  { %s2283_s9 = smov 0   ;;  %s2285_s30 = smov 0  }
  0x12 LB: > { %2630 = sst [smem:[#allocation7_spill]] %s2112_s8  ;;  %s2300_s3 = sadd.s32 4294967295, %s2124_s30   ;;  %s2124_s30 = sphi %s2285_s30, %s2656_s30   ;;  %s2120_s9 = sphi %s2283_s9, %s2658_s9   ;;  %s2116_s5 = sphi %s2281_s5, %s2660_s5   ;;  %s2112_s8 = sphi %s2279_s8, %s2659_s8  }
  0x13   : > { %2631 = sst [smem:[#allocation8_spill]] %s2120_s9  ;;  %s1790_s6 = sadd.s32 4294967294, %s2124_s30  }
  0x14   : > { %2632 = sst [smem:[#allocation9_spill]] %s2124_s30  ;;  %s2304_s10 = sadd.s32 1, %s2124_s30  }
  0x15   : > { %2633 = sst [smem:[#allocation10_spill]] %s2304_s10  ;;  %s641_s0 = sadd.s32 1, %s2120_s9 }
  0x16   : > { %s638_s11 = ssub.s32 %s2124_s30, %s2304_s10  ;;  %p651_p0 = scmp.ne.s32.totalorder %s2120_s9, %s2116_s5 }
  0x17   : > { %p639_p1 = scmp.eq.s32.totalorder %s638_s11, 0  ;;  %p652_p2 = scmp.eq.s32.totalorder %s2300_s3, 1 }
  0x18   : > { %p657_p3 = scmp.ne.s32.totalorder %s2116_s5, %s2112_s8  ;;  %p658_p4 = scmp.eq.s32.totalorder %s1790_s6, 1 }
  0x19   : > { %s2315_s29 = scalar_select %p639_p1, %s2120_s9, %s641_s0  }
  0x1a   : > { %p2317_p5 = por %p652_p2, %p651_p0  ;;  %p2321_p6 = por %p658_p4, %p657_p3 }
  0x1b   : > { %2634 = sst [smem:[#allocation11_spill]] %s2315_s29  ;;  %p1793_p7 = scmp.ge.s32.totalorder %s2124_s30, 1 }
  0x1c   : > { %s2636_s7 = scalar_select %p2321_p6, 1, 0 }
  0x1d   : > { %p764_p8 = scmp.lt.s32.totalorder %s2124_s30, 3 }
  0x1e   : > { %2637 = sst [smem:[#allocation12_spill]] %s2636_s7 }
  0x1f   : > { %p765_p9 = pnand %p1793_p7, %p764_p8 }
  0x20   : > { %p837_p10 = scmp.lt.s32.totalorder (!%p765_p9), %s2300_s3, 1  ;;  %s2638_s0 = sld [smem:[#allocation13_spill]] (!%p765_p9) }
  0x21   : > { %768 = sbr.rel (%p765_p9) target bundleno = 3444 (0xd74), region = 132  ;;  %s2639_s4 = sld [smem:[#allocation16_spill]] (!%p765_p9) }
  0x22   : > { %s2642_s10 = sld [smem:[#allocation18_spill]] (!%p765_p9)  ;;  %s2127_s29 = smov (!%p765_p9), 96  }
  0x23   : > { %s2643_s30 = sld [smem:[#allocation17_spill]] (!%p765_p9) }
  0x24   : > { %s2645_s8 = sld [smem:[#allocation22_spill]] (!%p765_p9) }
  0x25   : > { %s2648_s9 = sld [smem:[#allocation21_spill]] (!%p765_p9) }
  0x26   : > { %s838_s12 = scalar_select %p837_p10, %s2300_s3, 1  ;;  %vm845_vm0 = vcmask 261120   ;;  %v2126_v2 = vmov 32.0   ;;  %vm1101_vm12 = vcmask 130048  }
  0x27   : > { %2026 = vrcp.f32 %v2126_v2  ;;  %v1932_v14 = vld [vmem:[%s2639_s4 + $0x8] sm:$0xff]  ;;  %v1931_v15 = vld [vmem:[%s2639_s4] sm:$0xff]  ;;  %s2641_s4 = sld [smem:[#allocation15_spill]] }
  0x28   : > { %s1795_s1 = sshll.u32 %s838_s12, 3  ;;  %913 = vmatpush.bf16.msra.mxu2 %v1932_v14  ;;  %v1940_v32 = vld [vmem:[%s2642_s10 + $0x38] sm:$0xff]  ;;  %v1939_v33 = vld [vmem:[%s2642_s10 + $0x30] sm:$0xff]  ;;  %v1938_v34 = vld [vmem:[%s2642_s10 + $0x28] sm:$0xff]  ;;  %s2130_s12 = smov 48  }
  0x29   : > { %s840_s11 = scalar_lea.vmem %s2638_s0, %s1795_s1  ;;  %s2640_s1 = sld [smem:[#allocation14_spill]]  ;;  %1009 = vmatpush.bf16.msra.mxu1 %v1940_v32  ;;  %v1937_v35 = vld [vmem:[%s2642_s10 + $0x20] sm:$0xff]  ;;  %v1936_v36 = vld [vmem:[%s2642_s10 + $0x18] sm:$0xff]  ;;  %v1935_v37 = vld [vmem:[%s2642_s10 + $0x10] sm:$0xff] }
  0x2a   : > { %v842_v0 = vld [vmem:[%s840_s11] sm:$0xff]  ;;  %v1934_v38 = vld [vmem:[%s2642_s10 + $0x8] sm:$0xff]  ;;  %s2644_s0 = sld [smem:[#allocation19_spill]]  ;;  %s2646_s7 = smov %s2645_s8 }
  0x2b   : > { %v846_v1 = vsel %vm845_vm0, %v842_v0, 0.0  ;;  %v2010_v39 = vld [vmem:[%s2643_s30] ss:$0 sm:$0xff]  ;;  %s2647_s30 = sld [smem:[#allocation20_spill]]  ;;  %s2129_s11 = smov 112  }
  0x2c   : > { %847 = vadd.xlane.f32.xlu0 %v846_v1  ;;  %914 = vmatpush.bf16.msra.mxu2 %v1931_v15  ;;  %v1933_v40 = vld [vmem:[%s2642_s10] sm:$0xff]  ;;  %s2652_s13 = sld [smem:[#allocation26_spill]] }
  0x2d   : > { %v2027_v3 = vpop.eup %2026  ;;  %v2009_v28 = vld [vmem:[%s2641_s4] ss:$0 sm:$0xff]  ;;  %1010 = vmatpush.bf16.msra.mxu1 %v1939_v33  ;;  %s2131_s4 = smov 64  }
  0x2e   : > { %v850_v4 = vmul.f32 32.0, %v2027_v3  ;;  %vm854_vm1 = vweird.f32 %v2027_v3 }
  0x2f   : > { %v2008_v25 = vld [vmem:[%s2640_s1] ss:$0 sm:$0xff]  ;;  %s2132_s1 = smov 16  }
  0x30   : > { %v851_v5 = vsub.f32 1.0, %v850_v4  ;;  %v2011_v60 = vld [vmem:[%s2644_s0] ss:$0 sm:$0xff]  ;;  %s2649_s0 = sld [smem:[#allocation23_spill]] }
  0x31   : > { %1011 = vmatpush.bf16.msra.mxu1 %v1938_v34  ;;  %v1088_v34 = vlaneseq }
  0x32   : > { %v852_v6 = vmul.f32 %v2027_v3, %v851_v5 }
  0x34   : > { %v853_v7 = vadd.f32 %v2027_v3, %v852_v6 }
  0x35   : > { %1012 = vmatpush.bf16.msra.mxu1 %v1937_v35  ;;  %v1089_v35 = vshrl.u32 %v1088_v34, 7 }
  0x36   : > { %v2333_v8 = vsel %vm854_vm1, %v2027_v3, %v853_v7  ;;  %v1942_v7 = vld [vmem:[%s2645_s8 + $0x8] sm:$0xff]  ;;  %s2128_s8 = smov 80   ;;  %vm1123_vm1 = vcmask 64512  }
  0x37   : > { %1081 = vmatpush.bf16.msrb.mxu2 %v1942_v7 }
  0x39   : > { %1013 = vmatpush.bf16.msra.mxu1 %v1936_v36  ;;  %v1091_v36 = vand.u32 127, %v1088_v34 }
  0x3d   : > { %1014 = vmatpush.bf16.msra.mxu1 %v1935_v37  ;;  %v1092_v37 = vadd.s32 1, %v1089_v35 }
  0x3f   : > { %vm1093_vm13 = vcmp.le.s32.totalorder %v1091_v36, %v1092_v37 }
  0x41   : > { %1015 = vmatpush.bf16.msra.mxu1 %v1934_v38  ;;  %v1846_v38 = vadd.s32 4294967293, %v1089_v35 }
  0x43   : > { %vm1095_vm14 = vcmp.ge.s32.totalorder %v1091_v36, %v1846_v38 }
  0x44   : > { %vm1096_vm15 = vmand %vm1093_vm13, %vm1095_vm14  ;;  %vm1370_vm13 = vcmask 1046528   ;;  %vm1381_vm14 = vcmask 1045504  }
  0x45   : > { %1016 = vmatpush.bf16.msra.mxu1 %v1933_v40 }
  0x9f   : > { %v848_v9 = vpop.xlane.xlu0 %847 }
  0xa0   : > { %v856_v10 = vmul.f32 %v2333_v8, %v848_v9  ;;  %v1941_v9 = vld [vmem:[%s2646_s7] sm:$0xff] }
  0xa1   : > { %1082 = vmatpush.bf16.msrb.mxu2 %v1941_v9 }
  0xa2   : > { %v857_v11 = vsub.f32 %v842_v0, %v856_v10 }
  0xa4   : > { %v858_v12 = vmul.f32 %v857_v11, %v857_v11 }
  0xa6   : > { %v859_v13 = vsel %vm845_vm0, %v858_v12, 0.0 }
  0xa7   : > { %860 = vadd.xlane.f32.xlu0 %v859_v13 }
 0x11a   : > { %v861_v16 = vpop.xlane.xlu0 %860 }
 0x11b   : > { %v862_v17 = vmul.f32 %v861_v16, %v2333_v8 }
 0x11d   : > { %v863_v18 = vadd.f32 1e-05, %v862_v17 }
 0x11f   : > { %2028 = vrsqrt.f32 %v863_v18  ;;  %vm870_vm3 = vweird.f32 %v863_v18 }
 0x125   : > { %v2029_v19 = vpop.eup %2028 }
 0x126   : > { %v865_v20 = vmul.f32 %v2029_v19, %v863_v18  ;;  %vm871_vm2 = vweird.f32 %v2029_v19 }
 0x127   : > { %vm872_vm4 = vmor %vm870_vm3, %vm871_vm2  ;;  %vm1141_vm2 = vcmask 1043456   ;;  %vm1221_vm3 = vcmask 261248  }
 0x128   : > { %v866_v21 = vmul.f32 %v2029_v19, %v865_v20 }
 0x12a   : > { %v867_v22 = vmul.f32 0.5, %v866_v21 }
 0x12c   : > { %v868_v23 = vsub.f32 1.5, %v867_v22  ;;  %v2013_v22 = vld [vmem:[%s2648_s9] ss:$0 sm:$0xff] }
 0x12e   : > { %v869_v24 = vmul.f32 %v2029_v19, %v868_v23 }
 0x130   : > { %v873_v26 = vsel %vm872_vm4, %v2029_v19, %v869_v24  ;;  %v2012_v19 = vld [vmem:[%s2647_s30] ss:$0 sm:$0xff]  ;;  %s1928_s30 = sshll.u32 %s2300_s3, 3 }
 0x131   : > { %v874_v27 = vmul.f32 %v873_v26, %v857_v11 }
 0x133   : > { %v878_v29 = vmul.f32 %v2008_v25, %v874_v27 }
 0x135   : > { %v882_v30 = vadd.f32 %v2009_v28, %v878_v29 }
 0x137   : > { %v887_v31 = vpack.c.bf16 %v882_v30, %v882_v30 }
 0x139   : > { %1804 = vmatmul.msk.bf16.vlgmr.msra.gmra.mxu2 %vm845_vm0, %v887_v31 }
 0x1bc   : > { %v916_v41 = vpop.f32.mrf.mxu2 }
 0x1bd   : > { %v917_v42 = vadd.f32 %v2010_v39, %v916_v41 }
 0x1bf   : > { %v920_v43 = vsub.f32 0.0, %v917_v42 }
 0x1c1   : > { %v921_v44 = vmul.f32 1.442695, %v920_v43 }
 0x1c3   : > { %2030 = vpow2.f32 %v921_v44 }
 0x1c4   : > { %v918_v45 = vpop.f32.mrf.mxu2 }
 0x1c9   : > { %v2031_v46 = vpop.eup %2030 }
 0x1ca   : > { %v923_v47 = vadd.f32 1.0, %v2031_v46 }
 0x1cc   : > { %2032 = vrcp.f32 %v923_v47  ;;  %v935_v51 = vand.u32 2147483648, %v923_v47  ;;  %v933_v53 = vand.u32 2147483647, %v923_v47  ;;  %vm929_vm6 = vweird.f32 %v923_v47 }
 0x1ce   : > { %v936_v55 = vor.u32 1.1754944e-38, %v935_v51  ;;  %vm934_vm8 = vcmp.eq.f32.partialorder %v933_v53, 8.507059e+37 }
 0x1d2   : > { %v2033_v48 = vpop.eup %2032 }
 0x1d3   : > { %v925_v49 = vmul.f32 %v2033_v48, %v923_v47  ;;  %vm930_vm5 = vweird.f32 %v2033_v48 }
 0x1d4   : > { %vm931_vm7 = vmor %vm929_vm6, %vm930_vm5 }
 0x1d5   : > { %v926_v50 = vsub.f32 1.0, %v925_v49 }
 0x1d7   : > { %v927_v52 = vmul.f32 %v2033_v48, %v926_v50 }
 0x1d9   : > { %v928_v54 = vadd.f32 %v2033_v48, %v927_v52 }
 0x1db   : > { %v932_v56 = vsel %vm931_vm7, %v2033_v48, %v928_v54  ;;  %vm1355_vm7 = vcmask 521216  }
 0x1dc   : > { %v937_v57 = vsel %vm934_vm8, %v936_v55, %v932_v56 }
 0x1dd   : > { %v939_v58 = vmul.f32 %v937_v57, %v917_v42 }
 0x1df   : > { %v956_v59 = vpack.c.bf16 %v939_v58, %v939_v58 }
 0x1e1   : > { %1017 = vmatmul.bf16.vlgmr.msra.gmra.mxu1 %v956_v59 }
 0x25e   : > { %v1018_v61 = vpop.f32.mrf.mxu1 }
 0x25f   : > { %v1019_v62 = vadd.f32 %v2011_v60, %v1018_v61 }
 0x261   : > { %v2381_v63 = vmul.f32 0.5, %v1019_v62 }
 0x263   : > { %v1025_v0 = vsel %vm845_vm0, %v2381_v63, 0.0 }
 0x264   : > { %1026 = vadd.xlane.f32.xlu1 %v1025_v0 }
 0x266   : > { %v1020_v1 = vpop.f32.mrf.mxu1 }
 0x2d7   : > { %v1027_v2 = vpop.xlane.xlu1 %1026 }
 0x2d8   : > { %v1028_v3 = vmul.f32 %v1027_v2, %v2333_v8 }
 0x2da   : > { %v1029_v4 = vsub.f32 %v2381_v63, %v1028_v3 }
 0x2dc   : > { %v1030_v5 = vmul.f32 %v1029_v4, %v1029_v4 }
 0x2de   : > { %v1031_v6 = vsel %vm845_vm0, %v1030_v5, 0.0 }
 0x2df   : > { %1032 = vadd.xlane.f32.xlu1 %v1031_v6 }
 0x352   : > { %v1033_v10 = vpop.xlane.xlu1 %1032 }
 0x353   : > { %v1034_v11 = vmul.f32 %v1033_v10, %v2333_v8 }
 0x355   : > { %v1035_v12 = vadd.f32 1e-05, %v1034_v11 }
 0x357   : > { %2034 = vrsqrt.f32 %v1035_v12  ;;  %vm1042_vm10 = vweird.f32 %v1035_v12 }
 0x35d   : > { %v2035_v13 = vpop.eup %2034 }
 0x35e   : > { %v1037_v14 = vmul.f32 %v2035_v13, %v1035_v12  ;;  %vm1043_vm9 = vweird.f32 %v2035_v13 }
 0x35f   : > { %vm1044_vm11 = vmor %vm1042_vm10, %vm1043_vm9 }
 0x360   : > { %v1038_v15 = vmul.f32 %v2035_v13, %v1037_v14  ;;  %v1943_v14 = vld [vmem:[%s2649_s0] sm:$0xff] }
 0x362   : > { %v1039_v16 = vmul.f32 0.5, %v1038_v15 }
 0x364   : > { %v1040_v17 = vsub.f32 1.5, %v1039_v16 }
 0x366   : > { %v1041_v18 = vmul.f32 %v2035_v13, %v1040_v17 }
 0x368   : > { %v1045_v20 = vsel %vm1044_vm11, %v2035_v13, %v1041_v18  ;;  %v1944_v13 = vld [vmem:[%s2649_s0 + $0x8] sm:$0xff] }
 0x369   : > { %v1046_v21 = vmul.f32 %v1045_v20, %v1029_v4 }
 0x36b   : > { %v1050_v23 = vmul.f32 %v2012_v19, %v1046_v21 }
 0x36d   : > { %v1054_v24 = vadd.f32 %v2013_v22, %v1050_v23 }
 0x36f   : > { %v1059_v25 = vpack.c.bf16 %v1054_v24, %v1054_v24 }
 0x371   : > { %1845 = vmatmul.msk.bf16.vlgmr.msrb.gmra.mxu2 %vm845_vm0, %v1059_v25 }
 0x3f4   : > { %v1084_v26 = vpop.f32.mrf.mxu2 }
 0x3f5   : > { %v1097_v27 = vpack.c.bf16 %v1084_v26, %v1084_v26 }
 0x3f7   : > { %1099 = vrot.lane.b32.xlu0 %v1097_v27, %s2127_s29  ;;  %1161 = vrot.lane.b32.xlu2 %v1097_v27, %s2128_s8  ;;  %s1726_s29 = scalar_lea.hbm %s2601_s28, %s1928_s30 }
 0x3f8   : > { %s1730_s10 = sshll.u32 %s1726_s29, 4  ;;  %s1731_s10 = int_to_ptr.hbm [resolvable:$true] %s1730_s10 }
 0x3fc   : > { %v1086_v28 = vpop.f32.mrf.mxu2 }
 0x3ff   : > { %1159 = vrot.lane.b32.xlu2 %v1097_v27, %s2129_s11  ;;  %s2651_s11 = sld [smem:[#allocation25_spill]] }
 0x451   : > { %v1162_v29 = vpop.permute.xlu2 %1161 }
 0x452   : > { %v1167_v30 = vsel %vm1101_vm12, %v1162_v29, 0  ;;  %v1946_v29 = vld [vmem:[%s2587_s14 + $0x8] sm:$0xff] }
 0x453   : > { %1176 = vmatpush.bf16.xpose.msra.mxu2 %v1167_v30 }
 0x459   : > { %v1160_v31 = vpop.permute.xlu2 %1159 }
 0x45a   : > { %1849 = vmatmul.msk.bf16.vlgmr.msra.gmra.mxu2 %vm1101_vm12, %v1160_v31 }
 0x45b   : > { %1324 = vmatpush.bf16.msrb.mxu2 %v1946_v29 }
 0x469   : > { %v1100_v32 = vpop.permute.xlu0 %1099 }
 0x46a   : > { %v1106_v33 = vsel %vm1101_vm12, %v1100_v32, 0 }
 0x46b   : > { %1115 = vmatpush.bf16.xpose.msra.mxu3 %v1106_v33 }
 0x472   : > { %1847 = vmatmul.msk.bf16.vlgmr.msra.gmra.mxu3 %vm1101_vm12, %v1097_v27 }
 0x4dd   : > { %v1178_v39 = vpop.f32.mrf.mxu2 }
 0x4de   : > { %v1182_v40 = vmul.f32 0.25, %v1178_v39  ;;  %v2015_v39 = vld [vmem:[%s2651_s11] ss:$0 sm:$0xff] }
 0x4e0   : > { %v1183_v41 = vsel %vm1096_vm15, %v1182_v40, -1e+30 }
 0x4e1   : > { %v1184_v42 = vsel %vm1123_vm1, %v1183_v41, -inf }
 0x4e2   : > { %1185 = vmax.xlane.f32.xlu1 %v1184_v42  ;;  %v2016_v42 = vld [vmem:[%s2652_s13] ss:$0 sm:$0xff] }
 0x4e5   : > { %v1180_v43 = vpop.f32.mrf.mxu2 }
 0x4f5   : > { %v1117_v44 = vpop.f32.mrf.mxu3 }
 0x4f6   : > { %v1121_v45 = vmul.f32 0.25, %v1117_v44 }
 0x4f8   : > { %v1122_v46 = vsel %vm1096_vm15, %v1121_v45, -1e+30  ;;  %vm1392_vm15 = vcmask 1044480  }
 0x4f9   : > { %v1124_v47 = vsel %vm1123_vm1, %v1122_v46, -inf }
 0x4fa   : > { %1125 = vmax.xlane.f32.xlu2 %v1124_v47 }
 0x4fd   : > { %v1119_v48 = vpop.f32.mrf.mxu3 }
 0x555   : > { %v1186_v49 = vpop.xlane.xlu1 %1185 }
 0x556   : > { %v1187_v50 = vsub.f32 %v1183_v41, %v1186_v49  ;;  %v2133_v49 = vmov 0.0  }
 0x557   : > { %1356 = vst.msk [vmem:[#allocation3] sm:$0x3f] %vm1355_vm7, %v2133_v49 }
 0x558   : > { %v1188_v51 = vmul.f32 1.442695, %v1187_v50 }
 0x55a   : > { %2036 = vpow2.f32 %v1188_v51 }
 0x560   : > { %v2037_v52 = vpop.eup %2036 }
 0x561   : > { %v1190_v53 = vsel %vm1123_vm1, %v2037_v52, 0.0 }
 0x562   : > { %1191 = vadd.xlane.f32.xlu1 %v1190_v53 }
 0x56d   : > { %v1126_v54 = vpop.xlane.xlu2 %1125 }
 0x56e   : > { %v1127_v55 = vsub.f32 %v1122_v46, %v1126_v54  ;;  %v2017_v46 = vld [vmem:[%s2588_s15] ss:$0 sm:$0xff] }
 0x570   : > { %v1128_v56 = vmul.f32 1.442695, %v1127_v55 }
 0x572   : > { %2038 = vpow2.f32 %v1128_v56 }
 0x578   : > { %v2039_v57 = vpop.eup %2038 }
 0x579   : > { %v1130_v58 = vsel %vm1123_vm1, %v2039_v57, 0.0 }
 0x57a   : > { %1131 = vadd.xlane.f32.xlu0 %v1130_v58 }
 0x57b   : > { %1196 = vrot.lane.b32.xlu1 %v1097_v27, %s2130_s12  ;;  %s2650_s12 = sld [smem:[#allocation24_spill]] }
 0x581   : > { %v2014_v18 = vld [vmem:[%s2650_s12] ss:$0 sm:$0xff]  ;;  %s834_s12 = sand.u32 1, %s2116_s5  }
 0x582   : > { %s1716_s6 = scalar_lea.sflag [#allocation5], %s834_s12 }
 0x583   : > { %1136 = vrot.lane.b32.xlu1 %v1097_v27, %s2131_s4 }
 0x5d5   : > { %v1192_v59 = vpop.xlane.xlu1 %1191 }
 0x5d6   : > { %2040 = vrcp.f32 %v1192_v59 }
 0x5dc   : > { %v2041_v60 = vpop.eup %2040 }
 0x5dd   : > { %v1194_v61 = vmul.f32 %v2041_v60, %v2037_v52 }
 0x5df   : > { %v1195_v2 = vpack.c.bf16 %v1194_v61, %v1194_v61 }
 0x5ed   : > { %v1132_v62 = vpop.xlane.xlu0 %1131  ;;  %v1197_v0 = vpop.permute.xlu1 %1196 }
 0x5ee   : > { %2042 = vrcp.f32 %v1132_v62  ;;  %v1202_v1 = vsel %vm1141_vm2, %v1197_v0, 0 }
 0x5ef   : > { %1211 = vmatpush.bf16.msrb.mxu3 %v1202_v1 }
 0x5f2   : > { %1850 = vmatmul.msk.bf16.vlgmr.msrb.gmra.mxu3 %vm1123_vm1, %v1195_v2  ;;  %v1950_v2 = vld [vmem:[%s2591_s18 + $0x18] sm:$0xff] }
 0x5f3   : > { %1499 = vmatpush.bf16.msra.mxu3 %v1950_v2 }
 0x5f4   : > { %v2043_v3 = vpop.eup %2042 }
 0x5f5   : > { %v1137_v4 = vpop.permute.xlu1 %1136  ;;  %v1134_v5 = vmul.f32 %v2043_v3, %v2039_v57  ;;  %v1949_v3 = vld [vmem:[%s2591_s18 + $0x10] sm:$0xff] }
 0x5f6   : > { %v1143_v6 = vsel %vm1141_vm2, %v1137_v4, 0  ;;  %v1948_v4 = vld [vmem:[%s2591_s18 + $0x8] sm:$0xff] }
 0x5f7   : > { %1152 = vmatpush.bf16.msra.mxu0 %v1143_v6  ;;  %v1135_v7 = vpack.c.bf16 %v1134_v5, %v1134_v5  ;;  %1500 = vmatpush.bf16.msra.mxu3 %v1949_v3  ;;  %v1947_v5 = vld [vmem:[%s2591_s18] sm:$0xff] }
 0x5fa   : > { %1848 = vmatmul.msk.bf16.vlgmr.msra.gmra.mxu0 %vm1123_vm1, %v1135_v7  ;;  %vm1413_vm1 = vcmask 1042432  }
 0x5fb   : > { %1254 = vmatpush.bf16.msrb.mxu0 %v1944_v13  ;;  %1501 = vmatpush.bf16.msra.mxu3 %v1948_v4 }
 0x5ff   : > { %1255 = vmatpush.bf16.msrb.mxu0 %v1943_v14  ;;  %1502 = vmatpush.bf16.msra.mxu3 %v1947_v5 }
 0x675   : > { %v1213_v9 = vpop.f32.mrf.mxu3 }
 0x676   : > { %1218 = vrot.lane.b32.xlu2 %v1213_v9, %s2132_s1  ;;  %v1361_v9 = vld [vmem:[%s2589_s16] sm:$0x7f]  ;;  %s1794_s1 = sshll.u32 %s834_s12, 3 }
 0x677   : > { %v1154_v10 = vpop.f32.mrf.mxu0  ;;  %v1398_v13 = vperm.slane %v1361_v9, 4  ;;  %s836_s7 = scalar_lea.vmem [#allocation4], %s1794_s1  ;;  %s2082_s1 = scalar_lea.hbm %s2601_s28, 16 }
 0x678   : > { %1158 = vst.msk [vmem:[#allocation2] sm:$0xff] %vm1101_vm12, %v1154_v10  ;;  %vm1357_vm12 = vcmask 523264   ;;  %v1365_v10 = vperm.slane %v1361_v9, 1  ;;  %s1728_s3 = sshll.u32 %s836_s7, 4  ;;  %s1729_s3 = int_to_ptr.vmem [resolvable:$true] %s1728_s3 }
 0x67d   : > { %v1215_v11 = vpop.f32.mrf.mxu3 }
 0x67e   : > { %v1376_v11 = vperm.slane %v1361_v9, 2 }
 0x67f   : > { %v1156_v12 = vpop.f32.mrf.mxu0 }
 0x680   : > { %v1387_v12 = vperm.slane %v1361_v9, 3 }
 0x6d0   : > { %v1219_v15 = vpop.permute.xlu2 %1218 }
 0x6d1   : > { %1222 = vst.msk [vmem:[#allocation2] sm:$0xff] %vm1221_vm3, %v1219_v15  ;;  %vm1424_vm3 = vcmask 1041408  }
 0x6d8   : > { %v1223_v16 = vld [vmem:[#allocation2] sm:$0xff] }
 0x6d9   : > { %v1228_v17 = vpack.c.bf16 %v1223_v16, %v1223_v16  ;;  %v1362_v16 = vperm.slane %v1361_v9, 0 }
 0x6db   : > { %1859 = vmatmul.msk.bf16.vlgmr.msrb.gmra.mxu0 %vm845_vm0, %v1228_v17  ;;  %v1408_v17 = vperm.slane %v1361_v9, 5 }
 0x758   : > { %v1257_v19 = vpop.f32.mrf.mxu0 }
 0x759   : > { %v1258_v20 = vadd.f32 %v2014_v18, %v1257_v19 }
 0x75b   : > { %v2427_v21 = vadd.f32 %v1258_v20, %v2381_v63  ;;  %v1945_v63 = vld [vmem:[%s2587_s14] sm:$0xff] }
 0x75c   : > { %1325 = vmatpush.bf16.msrb.mxu2 %v1945_v63 }
 0x75d   : > { %v1264_v22 = vsel %vm845_vm0, %v2427_v21, 0.0 }
 0x75e   : > { %1265 = vadd.xlane.f32.xlu1 %v1264_v22  ;;  %v1419_v22 = vperm.slane %v1361_v9, 6 }
 0x760   : > { %v1259_v23 = vpop.f32.mrf.mxu0 }
 0x7d1   : > { %v1266_v24 = vpop.xlane.xlu1 %1265 }
 0x7d2   : > { %v1267_v25 = vmul.f32 %v1266_v24, %v2333_v8 }
 0x7d4   : > { %v1268_v26 = vsub.f32 %v2427_v21, %v1267_v25 }
 0x7d6   : > { %v1269_v27 = vmul.f32 %v1268_v26, %v1268_v26 }
 0x7d8   : > { %v1270_v28 = vsel %vm845_vm0, %v1269_v27, 0.0 }
 0x7d9   : > { %1271 = vadd.xlane.f32.xlu0 %v1270_v28 }
 0x84c   : > { %v1272_v30 = vpop.xlane.xlu0 %1271 }
 0x84d   : > { %v1273_v31 = vmul.f32 %v1272_v30, %v2333_v8 }
 0x84f   : > { %v1274_v32 = vadd.f32 1e-05, %v1273_v31 }
 0x851   : > { %2044 = vrsqrt.f32 %v1274_v32  ;;  %vm1281_vm5 = vweird.f32 %v1274_v32 }
 0x857   : > { %v2045_v33 = vpop.eup %2044 }
 0x858   : > { %v1276_v34 = vmul.f32 %v2045_v33, %v1274_v32  ;;  %vm1282_vm4 = vweird.f32 %v2045_v33 }
 0x859   : > { %vm1283_vm6 = vmor %vm1281_vm5, %vm1282_vm4 }
 0x85a   : > { %v1277_v35 = vmul.f32 %v2045_v33, %v1276_v34 }
 0x85c   : > { %v1278_v36 = vmul.f32 0.5, %v1277_v35 }
 0x85e   : > { %v1279_v37 = vsub.f32 1.5, %v1278_v36 }
 0x860   : > { %v1280_v38 = vmul.f32 %v2045_v33, %v1279_v37 }
 0x862   : > { %v1284_v40 = vsel %vm1283_vm6, %v2045_v33, %v1280_v38 }
 0x863   : > { %v1285_v41 = vmul.f32 %v1284_v40, %v1268_v26 }
 0x865   : > { %v1289_v43 = vmul.f32 %v2015_v39, %v1285_v41 }
 0x867   : > { %v1293_v44 = vadd.f32 %v2016_v42, %v1289_v43 }
 0x869   : > { %v1298_v45 = vpack.c.bf16 %v1293_v44, %v1293_v44 }
 0x86b   : > { %1868 = vmatmul.msk.bf16.vlgmr.msrb.gmra.mxu2 %vm845_vm0, %v1298_v45 }
 0x8ee   : > { %v1327_v47 = vpop.f32.mrf.mxu2 }
 0x8ef   : > { %v1328_v48 = vadd.f32 %v2017_v46, %v1327_v47 }
 0x8f1   : > { %v1331_v50 = vsub.f32 0.0, %v1328_v48 }
 0x8f3   : > { %v1332_v51 = vmul.f32 1.442695, %v1331_v50 }
 0x8f5   : > { %2046 = vpow2.f32 %v1332_v51 }
 0x8f6   : > { %v1329_v52 = vpop.f32.mrf.mxu2 }
 0x8fb   : > { %v2047_v53 = vpop.eup %2046 }
 0x8fc   : > { %v1334_v54 = vadd.f32 1.0, %v2047_v53 }
 0x8fe   : > { %2048 = vrcp.f32 %v1334_v54  ;;  %v1346_v58 = vand.u32 2147483648, %v1334_v54  ;;  %v1344_v60 = vand.u32 2147483647, %v1334_v54  ;;  %vm1340_vm9 = vweird.f32 %v1334_v54 }
 0x900   : > { %v1347_v62 = vor.u32 1.1754944e-38, %v1346_v58  ;;  %vm1345_vm11 = vcmp.eq.f32.partialorder %v1344_v60, 8.507059e+37 }
 0x904   : > { %v2049_v55 = vpop.eup %2048 }
 0x905   : > { %v1336_v56 = vmul.f32 %v2049_v55, %v1334_v54  ;;  %vm1341_vm8 = vweird.f32 %v2049_v55  ;;  %v2018_v54 = vld [vmem:[%s2590_s17] ss:$0 sm:$0xff] }
 0x906   : > { %vm1342_vm10 = vmor %vm1340_vm9, %vm1341_vm8 }
 0x907   : > { %v1337_v57 = vsub.f32 1.0, %v1336_v56 }
 0x909   : > { %v1338_v59 = vmul.f32 %v2049_v55, %v1337_v57 }
 0x90b   : > { %v1339_v61 = vadd.f32 %v2049_v55, %v1338_v59 }
 0x90d   : > { %v1343_v0 = vsel %vm1342_vm10, %v2049_v55, %v1339_v61 }
 0x90e   : > { %v1348_v1 = vsel %vm1345_vm11, %v1347_v62, %v1343_v0 }
 0x90f   : > { %1351 = vrot.lane.b32.xlu2 %v1348_v1, %s2131_s4  ;;  %s2076_s4 = sshra.s32 %s1731_s10, 4  ;;  %s2077_s4 = int_to_ptr.hbm [resolvable:$true] %s2076_s4 }
 0x910   : > { %s2078_s30 = scalar_lea.hbm %s2077_s4, 8  ;;  %p2083_p0 = scmp.lt.s32.totalorder %s2077_s4, %s2601_s28 }
 0x911   : > { %p2079_p11 = scmp.ne.s32.totalorder %s2077_s4, %s2078_s30  ;;  %p2084_p1 = scmp.lt.s32.totalorder %s2082_s1, %s2078_s30 }
 0x913   : > { %p2080_p12 = pnand %p2079_p11, %p2317_p5  ;;  %p2085_p2 = por %p2084_p1, %p2083_p0 }
 0x915   : > { %p2081_p13 = pneg %p2080_p12 }
 0x917   : > { %p2086_p3 = pnand %p2085_p2, %p2081_p13 }
 0x969   : > { %v1352_v6 = vpop.permute.xlu2 %1351 }
 0x96a   : > { %v1354_v7 = vmul.f32 %v1352_v6, %v1328_v48 }
 0x96c   : > { %1358 = vst.msk [vmem:[#allocation3 + $0x6] sm:$0xff] %vm1357_vm12, %v1354_v7 }
 0x973   : > { %v1359_v14 = vld [vmem:[#allocation3] sm:$0xff]  ;;  %v1360_v15 = vld [vmem:[#allocation3 + $0x8] sm:$0x3f] }
 0x974   : > { %v1366_v18 = vmul.f32 %v1365_v10, %v1359_v14  ;;  %v1367_v19 = vmul.f32 %v1365_v10, %v1360_v15  ;;  %v1377_v20 = vmul.f32 %v1376_v11, %v1359_v14  ;;  %v1378_v23 = vmul.f32 %v1376_v11, %v1360_v15 }
 0x975   : > { %v1388_v24 = vmul.f32 %v1387_v12, %v1359_v14  ;;  %v1389_v25 = vmul.f32 %v1387_v12, %v1360_v15  ;;  %v1399_v26 = vmul.f32 %v1398_v13, %v1359_v14  ;;  %v1400_v63 = vmul.f32 %v1398_v13, %v1360_v15  ;;  %v2019_v12 = vld [vmem:[%s2592_s19] ss:$0 sm:$0xff] }
 0x976   : > { %v1371_v27 = vrot.slane %v1366_v18, 1  ;;  %v1372_v28 = vrot.slane %v1367_v19, 1  ;;  %v1382_v29 = vrot.slane %v1377_v20, 2  ;;  %v1363_v30 = vmul.f32 %v1362_v16, %v1359_v14 }
 0x977   : > { %v1383_v31 = vrot.slane %v1378_v23, 2  ;;  %v1393_v32 = vrot.slane %v1388_v24, 3  ;;  %v1394_v34 = vrot.slane %v1389_v25, 3  ;;  %v1409_v35 = vmul.f32 %v1408_v17, %v1359_v14  ;;  %v1952_v24 = vld [vmem:[%s2595_s22 + $0x8] sm:$0xff] }
 0x978   : > { %v1373_v33 = vsel %vm1370_vm13, %v1371_v27, %v1372_v28  ;;  %v1410_v36 = vmul.f32 %v1408_v17, %v1360_v15  ;;  %v1403_v38 = vrot.slane %v1399_v26, 4  ;;  %v1404_v40 = vrot.slane %v1400_v63, 4  ;;  %1571 = vmatpush.bf16.msrb.mxu1 %v1952_v24 }
 0x979   : > { %v1375_v37 = vadd.f32 %v1373_v33, %v1363_v30  ;;  %v1384_v39 = vsel %vm1381_vm14, %v1382_v29, %v1383_v31  ;;  %v1420_v41 = vmul.f32 %v1419_v22, %v1359_v14  ;;  %v1421_v42 = vmul.f32 %v1419_v22, %v1360_v15  ;;  %v2020_v33 = vld [vmem:[%s2593_s20] ss:$0 sm:$0xff] }
 0x97a   : > { %v1395_v44 = vsel %vm1392_vm15, %v1393_v32, %v1394_v34  ;;  %v1414_v45 = vrot.slane %v1409_v35, 5  ;;  %v1415_v46 = vrot.slane %v1410_v36, 5  ;;  %v1405_v48 = vsel %vm1141_vm2, %v1403_v38, %v1404_v40  ;;  %v2021_v36 = vld [vmem:[%s2594_s21] ss:$0 sm:$0xff]  ;;  %v1960_v40 = vld [vmem:[%s2597_s24 + $0x38] sm:$0xff] }
 0x97b   : > { %v1386_v43 = vadd.f32 %v1384_v39, %v1375_v37  ;;  %v1425_v49 = vrot.slane %v1420_v41, 6  ;;  %v1426_v50 = vrot.slane %v1421_v42, 6  ;;  %1667 = vmatpush.bf16.msra.mxu0 %v1960_v40  ;;  %v1959_v41 = vld [vmem:[%s2597_s24 + $0x30] sm:$0xff]  ;;  %v1958_v42 = vld [vmem:[%s2597_s24 + $0x28] sm:$0xff] }
 0x97c   : > { %v1416_v52 = vsel %vm1413_vm1, %v1414_v45, %v1415_v46  ;;  %v2022_v45 = vld [vmem:[%s2596_s23] ss:$0 sm:$0xff]  ;;  %v1955_v46 = vld [vmem:[%s2597_s24 + $0x10] sm:$0xff] }
 0x97d   : > { %v1397_v47 = vadd.f32 %v1395_v44, %v1386_v43  ;;  %v1427_v55 = vsel %vm1424_vm3, %v1425_v49, %v1426_v50  ;;  %v1957_v43 = vld [vmem:[%s2597_s24 + $0x20] sm:$0xff]  ;;  %v1956_v44 = vld [vmem:[%s2597_s24 + $0x18] sm:$0xff]  ;;  %v1954_v49 = vld [vmem:[%s2597_s24 + $0x8] sm:$0xff] }
 0x97f   : > { %v1407_v51 = vadd.f32 %v1405_v48, %v1397_v47  ;;  %1668 = vmatpush.bf16.msra.mxu0 %v1959_v41 }
 0x981   : > { %v1418_v53 = vadd.f32 %v1416_v52, %v1407_v51  ;;  %v1953_v51 = vld [vmem:[%s2597_s24] sm:$0xff] }
 0x983   : > { %v1429_v56 = vadd.f32 %v1427_v55, %v1418_v53  ;;  %1669 = vmatpush.bf16.msra.mxu0 %v1958_v42 }
 0x985   : > { %v1434_v57 = vadd.f32 %v2018_v54, %v1429_v56 }
 0x987   : > { %v1435_v58 = vsub.f32 0.0, %v1434_v57  ;;  %1670 = vmatpush.bf16.msra.mxu0 %v1957_v43 }
 0x989   : > { %v1436_v59 = vmul.f32 1.442695, %v1435_v58 }
 0x98b   : > { %2050 = vpow2.f32 %v1436_v59  ;;  %1671 = vmatpush.bf16.msra.mxu0 %v1956_v44 }
 0x98f   : > { %1672 = vmatpush.bf16.msra.mxu0 %v1955_v46 }
 0x991   : > { %v2051_v60 = vpop.eup %2050 }
 0x992   : > { %v1438_v61 = vadd.f32 1.0, %v2051_v60 }
 0x993   : > { %1673 = vmatpush.bf16.msra.mxu0 %v1954_v49 }
 0x994   : > { %2052 = vrcp.f32 %v1438_v61  ;;  %v1450_v2 = vand.u32 2147483648, %v1438_v61  ;;  %v1448_v4 = vand.u32 2147483647, %v1438_v61  ;;  %vm1444_vm4 = vweird.f32 %v1438_v61 }
 0x996   : > { %v1451_v6 = vor.u32 1.1754944e-38, %v1450_v2  ;;  %vm1449_vm6 = vcmp.eq.f32.partialorder %v1448_v4, 8.507059e+37 }
 0x997   : > { %1674 = vmatpush.bf16.msra.mxu0 %v1953_v51 }
 0x99a   : > { %v2053_v62 = vpop.eup %2052 }
 0x99b   : > { %v1440_v0 = vmul.f32 %v2053_v62, %v1438_v61  ;;  %vm1445_vm2 = vweird.f32 %v2053_v62 }
 0x99c   : > { %vm1446_vm5 = vmor %vm1444_vm4, %vm1445_vm2 }
 0x99d   : > { %v1441_v1 = vsub.f32 1.0, %v1440_v0 }
 0x99f   : > { %v1442_v3 = vmul.f32 %v2053_v62, %v1441_v1 }
 0x9a1   : > { %v1443_v5 = vadd.f32 %v2053_v62, %v1442_v3 }
 0x9a3   : > { %v1447_v7 = vsel %vm1446_vm5, %v2053_v62, %v1443_v5  ;;  %v2023_v5 = vld [vmem:[%s2598_s25] ss:$0 sm:$0xff] }
 0x9a4   : > { %v1452_v9 = vsel %vm1449_vm6, %v1451_v6, %v1447_v7 }
 0x9a5   : > { %v1454_v10 = vmul.f32 %v1452_v9, %v1434_v57 }
 0x9a7   : > { %v1463_v11 = vpack.c.bf16 %v1454_v10, %v1454_v10 }
 0x9a9   : > { %1885 = vmatmul.msk.bf16.vlgmr.msra.gmra.mxu3 %vm1357_vm12, %v1463_v11 }
 0xa2c   : > { %v1504_v13 = vpop.f32.mrf.mxu3 }
 0xa2d   : > { %v1505_v14 = vadd.f32 %v2019_v12, %v1504_v13 }
 0xa2f   : > { %v2478_v15 = vadd.f32 %v1505_v14, %v2427_v21  ;;  %v1951_v21 = vld [vmem:[%s2595_s22] sm:$0xff] }
 0xa30   : > { %1572 = vmatpush.bf16.msrb.mxu1 %v1951_v21 }
 0xa31   : > { %v1511_v16 = vsel %vm845_vm0, %v2478_v15, 0.0 }
 0xa32   : > { %1512 = vadd.xlane.f32.xlu0 %v1511_v16 }
 0xa34   : > { %v1506_v17 = vpop.f32.mrf.mxu3 }
 0xaa5   : > { %v1513_v18 = vpop.xlane.xlu0 %1512 }
 0xaa6   : > { %v1514_v19 = vmul.f32 %v1513_v18, %v2333_v8 }
 0xaa8   : > { %v1515_v20 = vsub.f32 %v2478_v15, %v1514_v19 }
 0xaaa   : > { %v1516_v22 = vmul.f32 %v1515_v20, %v1515_v20 }
 0xaac   : > { %v1517_v23 = vsel %vm845_vm0, %v1516_v22, 0.0 }
 0xaad   : > { %1518 = vadd.xlane.f32.xlu2 %v1517_v23 }
 0xb20   : > { %v1519_v25 = vpop.xlane.xlu2 %1518 }
 0xb21   : > { %v1520_v26 = vmul.f32 %v1519_v25, %v2333_v8 }
 0xb23   : > { %v1521_v27 = vadd.f32 1e-05, %v1520_v26 }
 0xb25   : > { %2054 = vrsqrt.f32 %v1521_v27  ;;  %vm1528_vm8 = vweird.f32 %v1521_v27 }
 0xb2b   : > { %v2055_v28 = vpop.eup %2054 }
 0xb2c   : > { %v1523_v29 = vmul.f32 %v2055_v28, %v1521_v27  ;;  %vm1529_vm7 = vweird.f32 %v2055_v28  ;;  %v2024_v27 = vld [vmem:[%s2599_s26] ss:$0 sm:$0xff] }
 0xb2d   : > { %vm1530_vm9 = vmor %vm1528_vm8, %vm1529_vm7 }
 0xb2e   : > { %v1524_v63 = vmul.f32 %v2055_v28, %v1523_v29  ;;  %v2025_v29 = vld [vmem:[%s2600_s27] ss:$0 sm:$0xff] }
 0xb30   : > { %v1525_v30 = vmul.f32 0.5, %v1524_v63 }
 0xb32   : > { %v1526_v31 = vsub.f32 1.5, %v1525_v30 }
 0xb34   : > { %v1527_v32 = vmul.f32 %v2055_v28, %v1526_v31 }
 0xb36   : > { %v1531_v34 = vsel %vm1530_vm9, %v2055_v28, %v1527_v32 }
 0xb37   : > { %v1532_v35 = vmul.f32 %v1531_v34, %v1515_v20 }
 0xb39   : > { %v1536_v37 = vmul.f32 %v2020_v33, %v1532_v35 }
 0xb3b   : > { %v1540_v38 = vadd.f32 %v2021_v36, %v1536_v37 }
 0xb3d   : > { %v1545_v39 = vpack.c.bf16 %v1540_v38, %v1540_v38 }
 0xb3f   : > { %1894 = vmatmul.msk.bf16.vlgmr.msrb.gmra.mxu1 %vm845_vm0, %v1545_v39 }
 0xbbc   : > { %v1574_v47 = vpop.f32.mrf.mxu1 }
 0xbbd   : > { %v1575_v48 = vadd.f32 %v2022_v45, %v1574_v47 }
 0xbbf   : > { %v1578_v50 = vsub.f32 0.0, %v1575_v48 }
 0xbc1   : > { %v1579_v52 = vmul.f32 1.442695, %v1578_v50 }
 0xbc3   : > { %2056 = vpow2.f32 %v1579_v52 }
 0xbc4   : > { %v1576_v53 = vpop.f32.mrf.mxu1 }
 0xbc9   : > { %v2057_v54 = vpop.eup %2056 }
 0xbca   : > { %v1581_v55 = vadd.f32 1.0, %v2057_v54 }
 0xbcc   : > { %2058 = vrcp.f32 %v1581_v55  ;;  %v1593_v59 = vand.u32 2147483648, %v1581_v55  ;;  %v1591_v61 = vand.u32 2147483647, %v1581_v55  ;;  %vm1587_vm11 = vweird.f32 %v1581_v55 }
 0xbce   : > { %v1594_v0 = vor.u32 1.1754944e-38, %v1593_v59  ;;  %vm1592_vm13 = vcmp.eq.f32.partialorder %v1591_v61, 8.507059e+37 }
 0xbd2   : > { %v2059_v56 = vpop.eup %2058 }
 0xbd3   : > { %v1583_v57 = vmul.f32 %v2059_v56, %v1581_v55  ;;  %vm1588_vm10 = vweird.f32 %v2059_v56 }
 0xbd4   : > { %vm1589_vm12 = vmor %vm1587_vm11, %vm1588_vm10 }
 0xbd5   : > { %v1584_v58 = vsub.f32 1.0, %v1583_v57 }
 0xbd7   : > { %v1585_v60 = vmul.f32 %v2059_v56, %v1584_v58 }
 0xbd9   : > { %v1586_v62 = vadd.f32 %v2059_v56, %v1585_v60 }
 0xbdb   : > { %v1590_v1 = vsel %vm1589_vm12, %v2059_v56, %v1586_v62 }
 0xbdc   : > { %v1595_v2 = vsel %vm1592_vm13, %v1594_v0, %v1590_v1 }
 0xbdd   : > { %v1597_v3 = vmul.f32 %v1595_v2, %v1575_v48 }
 0xbdf   : > { %v1614_v4 = vpack.c.bf16 %v1597_v3, %v1597_v3 }
 0xbe1   : > { %1675 = vmatmul.bf16.vlgmr.msra.gmra.mxu0 %v1614_v4 }
 0xc5e   : > { %v1676_v6 = vpop.f32.mrf.mxu0 }
 0xc5f   : > { %v1677_v7 = vadd.f32 %v2023_v5, %v1676_v6 }
 0xc61   : > { %v1680_v9 = vmul.f32 0.5, %v1677_v7 }
 0xc63   : > { %v1681_v10 = vadd.f32 %v1680_v9, %v2478_v15 }
 0xc65   : > { %v1684_v11 = vsel %vm845_vm0, %v1681_v10, 0.0 }
 0xc66   : > { %v1678_v12 = vpop.f32.mrf.mxu0  ;;  %1685 = vadd.xlane.f32.xlu0 %v1684_v11 }
 0xcd9   : > { %v1686_v13 = vpop.xlane.xlu0 %1685 }
 0xcda   : > { %v1687_v14 = vmul.f32 %v1686_v13, %v2333_v8 }
 0xcdc   : > { %v1688_v16 = vsub.f32 %v1681_v10, %v1687_v14 }
 0xcde   : > { %v1689_v17 = vmul.f32 %v1688_v16, %v1688_v16 }
 0xce0   : > { %v1690_v18 = vsel %vm845_vm0, %v1689_v17, 0.0 }
 0xce1   : > { %1691 = vadd.xlane.f32.xlu0 %v1690_v18 }
 0xd54   : > { %v1692_v19 = vpop.xlane.xlu0 %1691 }
 0xd55   : > { %v1693_v20 = vmul.f32 %v1692_v19, %v2333_v8 }
 0xd57   : > { %v1694_v22 = vadd.f32 1e-05, %v1693_v20 }
 0xd59   : > { %2060 = vrsqrt.f32 %v1694_v22  ;;  %vm1701_vm15 = vweird.f32 %v1694_v22 }
 0xd5f   : > { %v2061_v15 = vpop.eup %2060 }
 0xd60   : > { %v1696_v23 = vmul.f32 %v2061_v15, %v1694_v22  ;;  %vm1702_vm14 = vweird.f32 %v2061_v15 }
 0xd61   : > { %vm1703_vm1 = vmor %vm1701_vm15, %vm1702_vm14 }
 0xd62   : > { %v1697_v24 = vmul.f32 %v2061_v15, %v1696_v23 }
 0xd64   : > { %v1698_v21 = vmul.f32 0.5, %v1697_v24 }
 0xd66   : > { %v1699_v25 = vsub.f32 1.5, %v1698_v21 }
 0xd68   : > { %v1700_v26 = vmul.f32 %v2061_v15, %v1699_v25 }
 0xd6a   : > { %v1704_v8 = vsel %vm1703_vm1, %v2061_v15, %v1700_v26 }
 0xd6b   : > { %v1705_v28 = vmul.f32 %v1704_v8, %v1688_v16 }
 0xd6d   : > { %v1709_v63 = vmul.f32 %v2024_v27, %v1705_v28 }
 0xd6f   : > { %v1713_v30 = vadd.f32 %v2025_v29, %v1709_v63 }
 0xd71   : > { %1714 = vst.msk [vmem:[%s836_s7] sm:$0xff] %vm845_vm0, %v1713_v30 }
 0xd72   : > { %2089 = shalt.err (!%p2086_p3)
}
 0xd73   : > { %1961 = dma.vmem_to_hbm [thread:$0]  (%p2317_p5), %s1729_s3, 128, %s1731_s10, %s1716_s6  }
 0xd74 PF: > { %s2653_s7 = sld [smem:[#allocation9_spill]] }
 0xd75   : > { %s2654_s12 = sld [smem:[#allocation7_spill]] }
 0xd7a   : > { %p1967_p4 = scmp.ge.s32.totalorder %s2653_s7, 2 }
 0xd7b   : > { %s1742_s13 = sand.u32 1, %s2654_s12  }
 0xd7c   : > { %p1964_p7 = pnand %p1967_p4, %p2321_p6  ;;  %s1743_s9 = scalar_lea.sflag [#allocation5], %s1742_s13 }
 0xd7e   : > { %p1965_p8 = pneg %p1964_p7 }
 0xd80   : > { %2107 = dma.done.wait (%p1965_p8), %s1743_s9, 128  }
 0xd81   : > { %2109 = vsyncadd (%p1965_p8), %s1743_s9, 4294967168  ;;  %s2656_s30 = sld [smem:[#allocation10_spill]]  ;;  %s2659_s8 = smov %s2116_s5 }
 0xd82   : > { %s2657_s4 = sld [smem:[#allocation8_spill]] }
 0xd83   : > { %s2658_s9 = sld [smem:[#allocation11_spill]] }
 0xd87   : > { %p38_p9 = scmp.ge.s32.totalorder %s2656_s30, 4  }
 0xd88   : > { %s2660_s5 = smov %s2657_s4 }
 0xd89   :  { %40 = sbr.rel (!%p38_p9) target bundleno = 18 (0x12), region = 167 }
 0xd8e   :  { %1749 = vsyncpa [#allocation5], 1 }
 0xd8f   :  { %1751 = vsyncpa [#allocation5 + $0x1], 1 }

</bundles_post_ra>
